<compile_context>
chip_gen: v6e
topology: v6e:2x2x1
jax: 0.10.0
libtpu: 0.0.40
codegen_flags: <defaults>
</compile_context>

<pallas_src>
import functools

import jax
import jax.numpy as jnp
from jax.experimental import pallas as pl
from jax.experimental.pallas import tpu as pltpu


def _conv_kernel(x_ref, dww_ref, dwb_ref, pww_ref, y_ref, st_ref, *,
                 K, S, TILE_H, Wo, mxu_dtype):
    """Depthwise KxK conv (stride S, bias) + pointwise 1x1 conv for one (batch, row-tile) step.

    x_ref   : (1, win, Wp, Cp)    padded input row window, win = (TILE_H-1)*S + K
    dww_ref : (K, K, Cp)          depthwise weights
    dwb_ref : (1, Cp)             depthwise bias
    pww_ref : (Cp, Cp)            pointwise weights laid out (C_in, C_out)
    y_ref   : (1, TILE_H, Wo, Cp) conv output tile (f32)
    st_ref  : (1, 1, 2, Cp)       per-tile channel [sum, sum_of_squares] for BN statistics
    """
    x = x_ref[0].astype(jnp.float32)                       # (win, Wp, Cp)
    Cp = x.shape[-1]
    w = dww_ref[...].astype(jnp.float32)                   # (K, K, Cp)  (loaded once, hoisted)

    row_lim = (TILE_H - 1) * S + 1
    col_lim = (Wo - 1) * S + 1

    # Depthwise bias folded into the accumulator init (saves one elementwise add pass).
    acc = jnp.broadcast_to(dwb_ref[0].astype(jnp.float32), (TILE_H, Wo, Cp))

    # Static tap loop.  The width (sublane-axis) slice is hoisted per dx so only K (not K*K)
    # sublane relayouts happen; the dy shifts are slices on the major dim (vreg selection only).
    # TODO(synk): the dx shift could be moved onto the XLU via pltpu.roll(x, Wp-dx, axis=1) plus
    #             an offset-0 slice; for S > 1 a one-time even/odd W de-interleave would also
    #             avoid strided sublane slices.
    for dx in range(K):
        xs = x[:, dx:dx + col_lim:S, :]                    # (win, Wo, Cp)
        for dy in range(K):
            acc = acc + xs[dy:dy + row_lim:S, :, :] * w[dy, dx, :]

    # Pointwise 1x1 conv == per-pixel channel matmul on the MXU.
    # (Pass mxu_dtype=jnp.bfloat16 on v6e/v7x for ~2x MXU throughput when tolerance allows;
    #  accumulation stays f32 via preferred_element_type.)
    y = jnp.dot(acc.reshape(TILE_H * Wo, Cp).astype(mxu_dtype),
                pww_ref[...].astype(mxu_dtype),
                preferred_element_type=jnp.float32)        # (TILE_H*Wo, Cp)

    # BN partial statistics straight from the f32 result (before any dtype cast).
    s0 = jnp.sum(y, axis=0, keepdims=True)                 # (1, Cp)
    s1 = jnp.sum(y * y, axis=0, keepdims=True)             # (1, Cp)
    st_ref[0, 0] = jnp.concatenate([s0, s1], axis=0)       # (2, Cp)

    y_ref[0] = y.reshape(TILE_H, Wo, Cp).astype(y_ref.dtype)


def _bn_apply_kernel(y_ref, scale_ref, shift_ref, o_ref):
    """Streaming BN apply: one fused multiply-add per element (stats pre-folded into scale/shift)."""
    o_ref[...] = (y_ref[...] * scale_ref[0] + shift_ref[0]).astype(o_ref.dtype)


def _pick_tile_h(Ho, Wo, Cp):
    """Divisor of Ho: f32 output block <= ~2 MiB, >=128 MXU rows and >=2 row tiles if possible."""
    budget = 2 * 1024 * 1024
    divisors = [d for d in range(1, Ho + 1) if Ho % d == 0]
    fits = [d for d in divisors if d * Wo * Cp * 4 <= budget] or [1]
    cand = [d for d in fits if d < Ho] or fits             # prefer >= 2 row tiles (pipeline/megacore)
    good = [d for d in cand if d * Wo >= 128]
    return min(good) if good else max(cand)


def _vmem_limit(block_bytes):
    """Explicit scoped-VMEM budget from block sizes: 2x double-buffer + 4x margin for temporaries."""
    est = 4 * 2 * sum(block_bytes) + (1 << 20)
    return int(min(max(est, 8 * 1024 * 1024), 32 * 1024 * 1024))


def separable_conv_block(x_nchw, params, *, kernel_size, stride, eps,
                         mxu_dtype=jnp.float32):
    """Matches SeparableConvBlock.forward for NCHW input x (training-mode BN, freeze_bn=False)."""
    dw_w = params["dw_w"].astype(jnp.float32)   # (C, 1, K, K)
    dw_b = params["dw_b"].astype(jnp.float32)   # (C,)
    pw_w = params["pw_w"].astype(jnp.float32)   # (C, C, 1, 1)
    gamma = params["gamma"].astype(jnp.float32)  # (C,)
    beta = params["beta"].astype(jnp.float32)    # (C,)

    N, C, H, W = x_nchw.shape
    K, S = kernel_size, stride
    P = K // 2
    Ho = (H + 2 * P - K) // S + 1
    Wo = (W + 2 * P - K) // S + 1
    Cp = ((C + 127) // 128) * 128               # lane-dense channel dim

    # ---- layout glue: NCHW -> NHWC, channel pad to Cp, spatial zero-pad ----
    x = jnp.transpose(x_nchw, (0, 2, 3, 1))
    xp = jnp.pad(x, ((0, 0), (P, P), (P, P), (0, Cp - C)))
    Wp = W + 2 * P

    TILE_H = _pick_tile_h(Ho, Wo, Cp)
    nHt = Ho // TILE_H
    win = (TILE_H - 1) * S + K

    # Overlapping (halo) row windows built wrapper-side; each grid step consumes one window.
    # TODO(synk): replace with pl.Element-indexed halo windows or a manual-DMA halo to avoid the
    #             ~win/TILE_H duplication of the input in HBM.
    xw = jnp.stack(
        [jax.lax.slice_in_dim(xp, t * TILE_H * S, t * TILE_H * S + win, axis=1)
         for t in range(nHt)],
        axis=1).reshape(N * nHt, win, Wp, Cp)

    dww = jnp.pad(jnp.transpose(dw_w[:, 0, :, :], (1, 2, 0)),
                  ((0, 0), (0, 0), (0, Cp - C)))            # (K, K, Cp)
    dwb = jnp.pad(dw_b, (0, Cp - C)).reshape(1, Cp)
    pww = jnp.pad(jnp.transpose(pw_w[:, :, 0, 0], (1, 0)),
                  ((0, Cp - C), (0, Cp - C)))               # (C_in, C_out) padded

    itemsize = jnp.dtype(xp.dtype).itemsize
    conv_blocks = [win * Wp * Cp * itemsize, K * K * Cp * 4, Cp * 4, Cp * Cp * 4,
                   TILE_H * Wo * Cp * 4, 2 * Cp * 4]

    y, stats = pl.pallas_call(
        functools.partial(_conv_kernel, K=K, S=S, TILE_H=TILE_H, Wo=Wo, mxu_dtype=mxu_dtype),
        out_shape=(jax.ShapeDtypeStruct((N, Ho, Wo, Cp), jnp.float32),
                   jax.ShapeDtypeStruct((N, nHt, 2, Cp), jnp.float32)),
        grid=(N, nHt),
        in_specs=[
            pl.BlockSpec((1, win, Wp, Cp), lambda n, t: (n * nHt + t, 0, 0, 0)),
            pl.BlockSpec((K, K, Cp), lambda n, t: (0, 0, 0)),
            pl.BlockSpec((1, Cp), lambda n, t: (0, 0)),
            pl.BlockSpec((Cp, Cp), lambda n, t: (0, 0)),
        ],
        out_specs=(
            pl.BlockSpec((1, TILE_H, Wo, Cp), lambda n, t: (n, t, 0, 0)),
            pl.BlockSpec((1, 1, 2, Cp), lambda n, t: (n, t, 0, 0)),
        ),
        compiler_params=pltpu.CompilerParams(
            dimension_semantics=("parallel", "parallel"),
            vmem_limit_bytes=_vmem_limit(conv_blocks)),
    )(xw, dww, dwb, pww)

    # ---- BN statistics: tiny reduction of per-tile partials, folded into scale / shift ----
    count = N * Ho * Wo
    tot = jnp.sum(stats, axis=(0, 1))                       # (2, Cp)
    mean = tot[0] / count
    var = tot[1] / count - mean * mean                      # biased variance (training-mode fwd)
    inv = jax.lax.rsqrt(var + eps)
    gamma_p = jnp.pad(gamma, (0, Cp - C))
    beta_p = jnp.pad(beta, (0, Cp - C))
    scale = (gamma_p * inv).reshape(1, Cp)
    shift = (beta_p - mean * gamma_p * inv).reshape(1, Cp)

    bn_blocks = [TILE_H * Wo * Cp * 4, Cp * 4, Cp * 4, TILE_H * Wo * Cp * 4]
    out = pl.pallas_call(
        _bn_apply_kernel,
        out_shape=jax.ShapeDtypeStruct((N, Ho, Wo, Cp), jnp.float32),
        grid=(N, nHt),
        in_specs=[
            pl.BlockSpec((1, TILE_H, Wo, Cp), lambda n, t: (n, t, 0, 0)),
            pl.BlockSpec((1, Cp), lambda n, t: (0, 0)),
            pl.BlockSpec((1, Cp), lambda n, t: (0, 0)),
        ],
        out_specs=pl.BlockSpec((1, TILE_H, Wo, Cp), lambda n, t: (n, t, 0, 0)),
        input_output_aliases={0: 0},            # normalize in place over y (no 2nd HBM buffer)
        compiler_params=pltpu.CompilerParams(
            dimension_semantics=("parallel", "parallel"),
            vmem_limit_bytes=_vmem_limit(bn_blocks)),
    )(y, scale, shift)

    # ---- back to NCHW, crop channel padding ----
    return jnp.transpose(out[..., :C], (0, 3, 1, 2)).astype(x_nchw.dtype)


def _reference(x_nchw, params, *, kernel_size, stride, eps):
    """Pure-JAX reference reproducing the PyTorch forward."""
    N, C, H, W = x_nchw.shape
    P = kernel_size // 2
    dw = jax.lax.conv_general_dilated(
        x_nchw, params["dw_w"], window_strides=(stride, stride),
        padding=[(P, P), (P, P)], feature_group_count=C,
        dimension_numbers=("NCHW", "OIHW", "NCHW"))
    dw = dw + params["dw_b"].reshape(1, C, 1, 1)
    pw = jax.lax.conv_general_dilated(
        dw, params["pw_w"], window_strides=(1, 1), padding=[(0, 0), (0, 0)],
        dimension_numbers=("NCHW", "OIHW", "NCHW"))
    mean = jnp.mean(pw, axis=(0, 2, 3), keepdims=True)
    var = jnp.mean((pw - mean) ** 2, axis=(0, 2, 3), keepdims=True)
    return ((pw - mean) / jnp.sqrt(var + eps)
            * params["gamma"].reshape(1, C, 1, 1)
            + params["beta"].reshape(1, C, 1, 1))


if __name__ == "__main__":
    N, C, H, W = 2, 8, 16, 16
    K, S, EPS = 3, 1, 1e-4

    key = jax.random.PRNGKey(0)
    k_x, k_dw, k_db, k_pw, k_g, k_b = jax.random.split(key, 6)

    x = jax.random.normal(k_x, (N, C, H, W), jnp.float32)
    params = {
        "dw_w": jax.random.normal(k_dw, (C, 1, K, K), jnp.float32) * 0.3,
        "dw_b": jax.random.normal(k_db, (C,), jnp.float32) * 0.1,
        "pw_w": jax.random.normal(k_pw, (C, C, 1, 1), jnp.float32) * 0.3,
        "gamma": jax.random.normal(k_g, (C,), jnp.float32) * 0.5 + 1.0,
        "beta": jax.random.normal(k_b, (C,), jnp.float32) * 0.1,
    }

    fwd = jax.jit(functools.partial(separable_conv_block,
                                    kernel_size=K, stride=S, eps=EPS))
    out = jax.block_until_ready(fwd(x, params))

    ref = _reference(x, params, kernel_size=K, stride=S, eps=EPS)
    assert out.shape == (N, C, H, W)
    max_err = float(jnp.max(jnp.abs(out - ref)))
    assert max_err < 1e-3, f"mismatch vs reference: {max_err}"

    print("KERNEL_OK")
</pallas_src>

<mosaic_0001>
module attributes {stable_mosaic.version = 11 : i64} {
  func.func @_conv_kernel(%arg0: i32, %arg1: i32, %arg2: memref<1x10x18x128xf32, #tpu.memory_space<vmem>>, %arg3: memref<3x3x128xf32, #tpu.memory_space<vmem>>, %arg4: memref<1x128xf32, #tpu.memory_space<vmem>>, %arg5: memref<128x128xf32, #tpu.memory_space<vmem>>, %arg6: memref<1x8x16x128xf32, #tpu.memory_space<vmem>>, %arg7: memref<1x1x2x128xf32, #tpu.memory_space<vmem>>) attributes {dimension_semantics = [#tpu.dimension_semantics<parallel>, #tpu.dimension_semantics<parallel>], iteration_bounds = array<i64: 2, 2>, scalar_prefetch = 0 : i64, scratch_operands = 0 : i64, tpu.core_type = #tpu.core_type<tc>, window_params = [{transform_indices = @transform_0, window_bounds = array<i64: 1, 10, 18, 128>}, {pipeline_mode = #tpu.pipeline_mode<synchronous>, transform_indices = @transform_1, window_bounds = array<i64: 3, 3, 128>}, {pipeline_mode = #tpu.pipeline_mode<synchronous>, transform_indices = @transform_2, window_bounds = array<i64: 1, 128>}, {pipeline_mode = #tpu.pipeline_mode<synchronous>, transform_indices = @transform_3, window_bounds = array<i64: 128, 128>}, {transform_indices = @transform_4, window_bounds = array<i64: 1, 8, 16, 128>}, {transform_indices = @transform_5, window_bounds = array<i64: 1, 1, 2, 128>}]} {
    %c0 = arith.constant 0 : index
    %c0_0 = arith.constant 0 : index
    %c0_1 = arith.constant 0 : index
    %c0_2 = arith.constant 0 : index
    %0 = vector.load %arg2[%c0, %c0_0, %c0_1, %c0_2] : memref<1x10x18x128xf32, #tpu.memory_space<vmem>>, vector<1x10x18x128xf32>
    %1 = vector.shape_cast %0 : vector<1x10x18x128xf32> to vector<10x18x128xf32>
    %c0_3 = arith.constant 0 : index
    %c0_4 = arith.constant 0 : index
    %c0_5 = arith.constant 0 : index
    %2 = vector.load %arg3[%c0_3, %c0_4, %c0_5] : memref<3x3x128xf32, #tpu.memory_space<vmem>>, vector<3x3x128xf32>
    %c0_6 = arith.constant 0 : index
    %c0_7 = arith.constant 0 : index
    %3 = vector.load %arg4[%c0_6, %c0_7] : memref<1x128xf32, #tpu.memory_space<vmem>>, vector<1x128xf32>
    %4 = vector.shape_cast %3 : vector<1x128xf32> to vector<128xf32>
    %5 = vector.shape_cast %4 : vector<128xf32> to vector<1x1x128xf32>
    %6 = vector.broadcast %5 : vector<1x1x128xf32> to vector<8x16x128xf32>
    %7 = vector.extract_strided_slice %1 {offsets = [0, 0, 0], sizes = [10, 16, 128], strides = [1, 1, 1]} : vector<10x18x128xf32> to vector<10x16x128xf32>
    %8 = vector.extract_strided_slice %7 {offsets = [0, 0, 0], sizes = [8, 16, 128], strides = [1, 1, 1]} : vector<10x16x128xf32> to vector<8x16x128xf32>
    %9 = vector.extract_strided_slice %2 {offsets = [0, 0, 0], sizes = [1, 1, 128], strides = [1, 1, 1]} : vector<3x3x128xf32> to vector<1x1x128xf32>
    %10 = vector.shape_cast %9 : vector<1x1x128xf32> to vector<128xf32>
    %11 = vector.shape_cast %10 : vector<128xf32> to vector<1x1x128xf32>
    %12 = vector.broadcast %11 : vector<1x1x128xf32> to vector<8x16x128xf32>
    %13 = arith.mulf %8, %12 : vector<8x16x128xf32>
    %14 = arith.addf %6, %13 : vector<8x16x128xf32>
    %15 = vector.extract_strided_slice %7 {offsets = [1, 0, 0], sizes = [8, 16, 128], strides = [1, 1, 1]} : vector<10x16x128xf32> to vector<8x16x128xf32>
    %16 = vector.extract_strided_slice %2 {offsets = [1, 0, 0], sizes = [1, 1, 128], strides = [1, 1, 1]} : vector<3x3x128xf32> to vector<1x1x128xf32>
    %17 = vector.shape_cast %16 : vector<1x1x128xf32> to vector<128xf32>
    %18 = vector.shape_cast %17 : vector<128xf32> to vector<1x1x128xf32>
    %19 = vector.broadcast %18 : vector<1x1x128xf32> to vector<8x16x128xf32>
    %20 = arith.mulf %15, %19 : vector<8x16x128xf32>
    %21 = arith.addf %14, %20 : vector<8x16x128xf32>
    %22 = vector.extract_strided_slice %7 {offsets = [2, 0, 0], sizes = [8, 16, 128], strides = [1, 1, 1]} : vector<10x16x128xf32> to vector<8x16x128xf32>
    %23 = vector.extract_strided_slice %2 {offsets = [2, 0, 0], sizes = [1, 1, 128], strides = [1, 1, 1]} : vector<3x3x128xf32> to vector<1x1x128xf32>
    %24 = vector.shape_cast %23 : vector<1x1x128xf32> to vector<128xf32>
    %25 = vector.shape_cast %24 : vector<128xf32> to vector<1x1x128xf32>
    %26 = vector.broadcast %25 : vector<1x1x128xf32> to vector<8x16x128xf32>
    %27 = arith.mulf %22, %26 : vector<8x16x128xf32>
    %28 = arith.addf %21, %27 : vector<8x16x128xf32>
    %29 = vector.extract_strided_slice %1 {offsets = [0, 1, 0], sizes = [10, 16, 128], strides = [1, 1, 1]} : vector<10x18x128xf32> to vector<10x16x128xf32>
    %30 = vector.extract_strided_slice %29 {offsets = [0, 0, 0], sizes = [8, 16, 128], strides = [1, 1, 1]} : vector<10x16x128xf32> to vector<8x16x128xf32>
    %31 = vector.extract_strided_slice %2 {offsets = [0, 1, 0], sizes = [1, 1, 128], strides = [1, 1, 1]} : vector<3x3x128xf32> to vector<1x1x128xf32>
    %32 = vector.shape_cast %31 : vector<1x1x128xf32> to vector<128xf32>
    %33 = vector.shape_cast %32 : vector<128xf32> to vector<1x1x128xf32>
    %34 = vector.broadcast %33 : vector<1x1x128xf32> to vector<8x16x128xf32>
    %35 = arith.mulf %30, %34 : vector<8x16x128xf32>
    %36 = arith.addf %28, %35 : vector<8x16x128xf32>
    %37 = vector.extract_strided_slice %29 {offsets = [1, 0, 0], sizes = [8, 16, 128], strides = [1, 1, 1]} : vector<10x16x128xf32> to vector<8x16x128xf32>
    %38 = vector.extract_strided_slice %2 {offsets = [1, 1, 0], sizes = [1, 1, 128], strides = [1, 1, 1]} : vector<3x3x128xf32> to vector<1x1x128xf32>
    %39 = vector.shape_cast %38 : vector<1x1x128xf32> to vector<128xf32>
    %40 = vector.shape_cast %39 : vector<128xf32> to vector<1x1x128xf32>
    %41 = vector.broadcast %40 : vector<1x1x128xf32> to vector<8x16x128xf32>
    %42 = arith.mulf %37, %41 : vector<8x16x128xf32>
    %43 = arith.addf %36, %42 : vector<8x16x128xf32>
    %44 = vector.extract_strided_slice %29 {offsets = [2, 0, 0], sizes = [8, 16, 128], strides = [1, 1, 1]} : vector<10x16x128xf32> to vector<8x16x128xf32>
    %45 = vector.extract_strided_slice %2 {offsets = [2, 1, 0], sizes = [1, 1, 128], strides = [1, 1, 1]} : vector<3x3x128xf32> to vector<1x1x128xf32>
    %46 = vector.shape_cast %45 : vector<1x1x128xf32> to vector<128xf32>
    %47 = vector.shape_cast %46 : vector<128xf32> to vector<1x1x128xf32>
    %48 = vector.broadcast %47 : vector<1x1x128xf32> to vector<8x16x128xf32>
    %49 = arith.mulf %44, %48 : vector<8x16x128xf32>
    %50 = arith.addf %43, %49 : vector<8x16x128xf32>
    %51 = vector.extract_strided_slice %1 {offsets = [0, 2, 0], sizes = [10, 16, 128], strides = [1, 1, 1]} : vector<10x18x128xf32> to vector<10x16x128xf32>
    %52 = vector.extract_strided_slice %51 {offsets = [0, 0, 0], sizes = [8, 16, 128], strides = [1, 1, 1]} : vector<10x16x128xf32> to vector<8x16x128xf32>
    %53 = vector.extract_strided_slice %2 {offsets = [0, 2, 0], sizes = [1, 1, 128], strides = [1, 1, 1]} : vector<3x3x128xf32> to vector<1x1x128xf32>
    %54 = vector.shape_cast %53 : vector<1x1x128xf32> to vector<128xf32>
    %55 = vector.shape_cast %54 : vector<128xf32> to vector<1x1x128xf32>
    %56 = vector.broadcast %55 : vector<1x1x128xf32> to vector<8x16x128xf32>
    %57 = arith.mulf %52, %56 : vector<8x16x128xf32>
    %58 = arith.addf %50, %57 : vector<8x16x128xf32>
    %59 = vector.extract_strided_slice %51 {offsets = [1, 0, 0], sizes = [8, 16, 128], strides = [1, 1, 1]} : vector<10x16x128xf32> to vector<8x16x128xf32>
    %60 = vector.extract_strided_slice %2 {offsets = [1, 2, 0], sizes = [1, 1, 128], strides = [1, 1, 1]} : vector<3x3x128xf32> to vector<1x1x128xf32>
    %61 = vector.shape_cast %60 : vector<1x1x128xf32> to vector<128xf32>
    %62 = vector.shape_cast %61 : vector<128xf32> to vector<1x1x128xf32>
    %63 = vector.broadcast %62 : vector<1x1x128xf32> to vector<8x16x128xf32>
    %64 = arith.mulf %59, %63 : vector<8x16x128xf32>
    %65 = arith.addf %58, %64 : vector<8x16x128xf32>
    %66 = vector.extract_strided_slice %51 {offsets = [2, 0, 0], sizes = [8, 16, 128], strides = [1, 1, 1]} : vector<10x16x128xf32> to vector<8x16x128xf32>
    %67 = vector.extract_strided_slice %2 {offsets = [2, 2, 0], sizes = [1, 1, 128], strides = [1, 1, 1]} : vector<3x3x128xf32> to vector<1x1x128xf32>
    %68 = vector.shape_cast %67 : vector<1x1x128xf32> to vector<128xf32>
    %69 = vector.shape_cast %68 : vector<128xf32> to vector<1x1x128xf32>
    %70 = vector.broadcast %69 : vector<1x1x128xf32> to vector<8x16x128xf32>
    %71 = arith.mulf %66, %70 : vector<8x16x128xf32>
    %72 = arith.addf %65, %71 : vector<8x16x128xf32>
    %73 = vector.shape_cast %72 : vector<8x16x128xf32> to vector<128x128xf32>
    %c0_8 = arith.constant 0 : index
    %c0_9 = arith.constant 0 : index
    %74 = vector.load %arg5[%c0_8, %c0_9] : memref<128x128xf32, #tpu.memory_space<vmem>>, vector<128x128xf32>
    %cst = arith.constant dense<0.000000e+00> : vector<128x128xf32>
    %75 = tpu.matmul %73, %74, %cst {dimension_numbers = #tpu.dot_dimension_numbers<[1], [0], [0], [1], [0, 0, 1, 1], [], []>} : vector<128x128xf32>, vector<128x128xf32>, vector<128x128xf32> -> vector<128x128xf32>
    %cst_10 = arith.constant dense<0.000000e+00> : vector<128xf32>
    %76 = vector.multi_reduction <add>, %75, %cst_10 [0] : vector<128x128xf32> to vector<128xf32>
    %77 = vector.shape_cast %76 : vector<128xf32> to vector<1x128xf32>
    %78 = arith.mulf %75, %75 : vector<128x128xf32>
    %cst_11 = arith.constant dense<0.000000e+00> : vector<128xf32>
    %79 = vector.multi_reduction <add>, %78, %cst_11 [0] : vector<128x128xf32> to vector<128xf32>
    %80 = vector.shape_cast %79 : vector<128xf32> to vector<1x128xf32>
    %81 = tpu.concatenate %77, %80 in 0 : vector<1x128xf32>, vector<1x128xf32> -> vector<2x128xf32>
    %c0_12 = arith.constant 0 : index
    %c0_13 = arith.constant 0 : index
    %c0_14 = arith.constant 0 : index
    %c0_15 = arith.constant 0 : index
    %82 = vector.load %arg7[%c0_12, %c0_13, %c0_14, %c0_15] : memref<1x1x2x128xf32, #tpu.memory_space<vmem>>, vector<1x1x2x128xf32>
    %83 = vector.shape_cast %82 : vector<1x1x2x128xf32> to vector<2x128xf32>
    %84 = vector.shape_cast %81 : vector<2x128xf32> to vector<1x1x2x128xf32>
    tpu.vector_store %arg7[%c0_12, %c0_13, %c0_14, %c0_15], %84 {strides = array<i32>} : memref<1x1x2x128xf32, #tpu.memory_space<vmem>>, vector<1x1x2x128xf32>,
    %85 = vector.shape_cast %75 : vector<128x128xf32> to vector<8x16x128xf32>
    %c0_16 = arith.constant 0 : index
    %c0_17 = arith.constant 0 : index
    %c0_18 = arith.constant 0 : index
    %c0_19 = arith.constant 0 : index
    %86 = vector.load %arg6[%c0_16, %c0_17, %c0_18, %c0_19] : memref<1x8x16x128xf32, #tpu.memory_space<vmem>>, vector<1x8x16x128xf32>
    %87 = vector.shape_cast %86 : vector<1x8x16x128xf32> to vector<8x16x128xf32>
    %88 = vector.shape_cast %85 : vector<8x16x128xf32> to vector<1x8x16x128xf32>
    tpu.vector_store %arg6[%c0_16, %c0_17, %c0_18, %c0_19], %88 {strides = array<i32>} : memref<1x8x16x128xf32, #tpu.memory_space<vmem>>, vector<1x8x16x128xf32>,
    return
  }
  func.func @transform_0(%arg0: i32, %arg1: i32) -> (i32, i32, i32, i32) {
    %c2_i32 = arith.constant 2 : i32
    %0 = arith.muli %arg0, %c2_i32 : i32
    %1 = arith.addi %0, %arg1 : i32
    %c0_i32 = arith.constant 0 : i32
    %c0_i32_0 = arith.constant 0 : i32
    %c0_i32_1 = arith.constant 0 : i32
    %c0_i32_2 = arith.constant 0 : i32
    return %1, %c0_i32, %c0_i32_0, %c0_i32_1 : i32, i32, i32, i32
  }
  func.func @transform_1(%arg0: i32, %arg1: i32) -> (i32, i32, i32) {
    %c0_i32 = arith.constant 0 : i32
    %c0_i32_0 = arith.constant 0 : i32
    %c0_i32_1 = arith.constant 0 : i32
    %c0_i32_2 = arith.constant 0 : i32
    return %c0_i32, %c0_i32_0, %c0_i32_1 : i32, i32, i32
  }
  func.func @transform_2(%arg0: i32, %arg1: i32) -> (i32, i32) {
    %c0_i32 = arith.constant 0 : i32
    %c0_i32_0 = arith.constant 0 : i32
    %c0_i32_1 = arith.constant 0 : i32
    return %c0_i32, %c0_i32_0 : i32, i32
  }
  func.func @transform_3(%arg0: i32, %arg1: i32) -> (i32, i32) {
    %c0_i32 = arith.constant 0 : i32
    %c0_i32_0 = arith.constant 0 : i32
    %c0_i32_1 = arith.constant 0 : i32
    return %c0_i32, %c0_i32_0 : i32, i32
  }
  func.func @transform_4(%arg0: i32, %arg1: i32) -> (i32, i32, i32, i32) {
    %c0_i32 = arith.constant 0 : i32
    %c0_i32_0 = arith.constant 0 : i32
    %c0_i32_1 = arith.constant 0 : i32
    return %arg0, %arg1, %c0_i32, %c0_i32_0 : i32, i32, i32, i32
  }
  func.func @transform_5(%arg0: i32, %arg1: i32) -> (i32, i32, i32, i32) {
    %c0_i32 = arith.constant 0 : i32
    %c0_i32_0 = arith.constant 0 : i32
    %c0_i32_1 = arith.constant 0 : i32
    return %arg0, %arg1, %c0_i32, %c0_i32_0 : i32, i32, i32, i32
  }
}

module attributes {stable_mosaic.version = 11 : i64} {
  func.func @_bn_apply_kernel(%arg0: i32, %arg1: i32, %arg2: memref<1x8x16x128xf32, #tpu.memory_space<vmem>>, %arg3: memref<1x128xf32, #tpu.memory_space<vmem>>, %arg4: memref<1x128xf32, #tpu.memory_space<vmem>>, %arg5: memref<1x8x16x128xf32, #tpu.memory_space<vmem>>) attributes {dimension_semantics = [#tpu.dimension_semantics<parallel>, #tpu.dimension_semantics<parallel>], iteration_bounds = array<i64: 2, 2>, scalar_prefetch = 0 : i64, scratch_operands = 0 : i64, tpu.core_type = #tpu.core_type<tc>, window_params = [{transform_indices = @transform_0, window_bounds = array<i64: 1, 8, 16, 128>}, {pipeline_mode = #tpu.pipeline_mode<synchronous>, transform_indices = @transform_1, window_bounds = array<i64: 1, 128>}, {pipeline_mode = #tpu.pipeline_mode<synchronous>, transform_indices = @transform_2, window_bounds = array<i64: 1, 128>}, {transform_indices = @transform_3, window_bounds = array<i64: 1, 8, 16, 128>}]} {
    %c0 = arith.constant 0 : index
    %c0_0 = arith.constant 0 : index
    %c0_1 = arith.constant 0 : index
    %c0_2 = arith.constant 0 : index
    %0 = vector.load %arg2[%c0, %c0_0, %c0_1, %c0_2] : memref<1x8x16x128xf32, #tpu.memory_space<vmem>>, vector<1x8x16x128xf32>
    %c0_3 = arith.constant 0 : index
    %c0_4 = arith.constant 0 : index
    %1 = vector.load %arg3[%c0_3, %c0_4] : memref<1x128xf32, #tpu.memory_space<vmem>>, vector<1x128xf32>
    %2 = vector.shape_cast %1 : vector<1x128xf32> to vector<128xf32>
    %3 = vector.shape_cast %2 : vector<128xf32> to vector<1x1x1x128xf32>
    %4 = vector.broadcast %3 : vector<1x1x1x128xf32> to vector<1x8x16x128xf32>
    %5 = arith.mulf %0, %4 : vector<1x8x16x128xf32>
    %c0_5 = arith.constant 0 : index
    %c0_6 = arith.constant 0 : index
    %6 = vector.load %arg4[%c0_5, %c0_6] : memref<1x128xf32, #tpu.memory_space<vmem>>, vector<1x128xf32>
    %7 = vector.shape_cast %6 : vector<1x128xf32> to vector<128xf32>
    %8 = vector.shape_cast %7 : vector<128xf32> to vector<1x1x1x128xf32>
    %9 = vector.broadcast %8 : vector<1x1x1x128xf32> to vector<1x8x16x128xf32>
    %10 = arith.addf %5, %9 : vector<1x8x16x128xf32>
    %c0_7 = arith.constant 0 : index
    %c0_8 = arith.constant 0 : index
    %c0_9 = arith.constant 0 : index
    %c0_10 = arith.constant 0 : index
    %11 = vector.load %arg5[%c0_7, %c0_8, %c0_9, %c0_10] : memref<1x8x16x128xf32, #tpu.memory_space<vmem>>, vector<1x8x16x128xf32>
    tpu.vector_store %arg5[%c0_7, %c0_8, %c0_9, %c0_10], %10 {strides = array<i32>} : memref<1x8x16x128xf32, #tpu.memory_space<vmem>>, vector<1x8x16x128xf32>,
    return
  }
  func.func @transform_0(%arg0: i32, %arg1: i32) -> (i32, i32, i32, i32) {
    %c0_i32 = arith.constant 0 : i32
    %c0_i32_0 = arith.constant 0 : i32
    %c0_i32_1 = arith.constant 0 : i32
    return %arg0, %arg1, %c0_i32, %c0_i32_0 : i32, i32, i32, i32
  }
  func.func @transform_1(%arg0: i32, %arg1: i32) -> (i32, i32) {
    %c0_i32 = arith.constant 0 : i32
    %c0_i32_0 = arith.constant 0 : i32
    %c0_i32_1 = arith.constant 0 : i32
    return %c0_i32, %c0_i32_0 : i32, i32
  }
  func.func @transform_2(%arg0: i32, %arg1: i32) -> (i32, i32) {
    %c0_i32 = arith.constant 0 : i32
    %c0_i32_0 = arith.constant 0 : i32
    %c0_i32_1 = arith.constant 0 : i32
    return %c0_i32, %c0_i32_0 : i32, i32
  }
  func.func @transform_3(%arg0: i32, %arg1: i32) -> (i32, i32, i32, i32) {
    %c0_i32 = arith.constant 0 : i32
    %c0_i32_0 = arith.constant 0 : i32
    %c0_i32_1 = arith.constant 0 : i32
    return %arg0, %arg1, %c0_i32, %c0_i32_0 : i32, i32, i32, i32
  }
}

</mosaic_0001>

<bundles_post_ra>
// kernel: separable_conv_block.3
= control target key start
LH: loop header
LB: loop body
LE: loop exit
PB: predicated region body
PF: predicated region fallthrough
CT: control target
= control target key end

     0   :  { %s509_s12 = smov 0   ;;  %s511_s13 = smov 0   ;;  %s602_s0 = inlined_call_operand.vmem [shape: f32[2,16,16,128], index: 0, kind: input, shape index: {}, may-alias: {0,3}]   ;;  %s603_s1 = inlined_call_operand.vmem [shape: f32[1,128], index: 1, kind: input, shape index: {}]   ;;  %s604_s2 = inlined_call_operand.vmem [shape: f32[1,128], index: 2, kind: input, shape index: {}]   ;;  %s605_s3 = inlined_call_operand.vmem [shape: f32[2,16,16,128], index: 3, kind: output, shape index: {}, may-alias: {0,3}]  }
   0x1   :  { %s513_s14 = smov 0   ;;  %s515_s15 = smov 0  }
   0x2   :  { %s517_s16 = smov 0  }
   0x3 LB: > { %s22_s17 = sadd.s32 1, %s479_s14  ;;  %s25_s18 = sadd.s32 1, %s483_s15  ;;  %s487_s16 = sphi %s517_s16, %s13_s16   ;;  %s483_s15 = sphi %s515_s15, %s609_s15   ;;  %s479_s14 = sphi %s513_s14, %s608_s14   ;;  %s475_s13 = sphi %s511_s13, %s607_s13   ;;  %s471_s12 = sphi %s509_s12, %s606_s12  }
   0x4   : > { %p23_p0 = scmp.ge.s32.totalorder %s22_s17, 2  ;;  %p396_p1 = scmp.ge.s32.totalorder %s487_s16, 1 }
   0x5   : > { %p159_p2 = scmp.lt.s32.totalorder %s487_s16, 5 }
   0x6   : > { %s611_s17 = smov (%p23_p0, %s22_s17), 0  ;;  %s613_s18 = smov (!%p23_p0, %s25_s18), %s483_s15 }
   0x7   : > { %p160_p3 = pnand %p396_p1, %p159_p2  ;;  %p27_p4 = scmp.ge.s32.totalorder %s613_s18, 2 }
   0x8   : > { %s397_s19 = sshll.u32 (!%p160_p3), %s471_s12, 3  ;;  %p194_p5 = scmp.lt.s32.totalorder (!%p160_p3), %s475_s13, 1 }
   0x9   : > { %s615_s18 = smov (%p27_p4, %s613_s18), 0  ;;  %163 = sbr.rel (%p160_p3) target bundleno = 35 (0x23), region = 32 }
   0xa   : > { %p196_p6 = scmp.lt.s32.totalorder (!%p160_p3), %s397_s19, 15 }
   0xe   : > { %s617_s13 = smov (!%p194_p5, %s475_s13), 1  ;;  %s619_s19 = smov (!%p196_p6, %s397_s19), 15  ;;  %v405_v0 = vld [vmem:[%s603_s1] ss:$0 sm:$0xff] }
   0xf   : > { %s399_s20 = sshll.u32 %s617_s13, 5  ;;  %s398_s21 = sshll.u32 %s619_s19, 1  ;;  %v406_v1 = vld [vmem:[%s604_s2] ss:$0 sm:$0xff] }
  0x10   : > { %s200_s22 = sadd.s32 %s399_s20, %s398_s21 }
  0x11   : > { %s400_s23 = sshll.u32 %s200_s22, 3 }
  0x12   : > { %s545_s28 = scalar_lea.vmem %s602_s0, %s400_s23  ;;  %s562_s6 = scalar_lea.vmem %s605_s3, %s400_s23 }
  0x13   : > { %v215_v2 = vld [vmem:[%s545_s28] sm:$0xff]  ;;  %v216_v3 = vld [vmem:[%s545_s28 + $0x8] sm:$0xff]  ;;  %v217_v4 = vld [vmem:[%s545_s28 + $0x10] sm:$0xff] }
  0x14   : > { %v218_v5 = vld [vmem:[%s545_s28 + $0x18] sm:$0xff]  ;;  %v219_v6 = vld [vmem:[%s545_s28 + $0x20] sm:$0xff]  ;;  %v220_v7 = vld [vmem:[%s545_s28 + $0x28] sm:$0xff]  ;;  %v238_v8 = vmul.f32 %v405_v0, %v215_v2  ;;  %v239_v9 = vmul.f32 %v405_v0, %v216_v3  ;;  %v240_v10 = vmul.f32 %v405_v0, %v217_v4 }
  0x15   : > { %v221_v11 = vld [vmem:[%s545_s28 + $0x30] sm:$0xff]  ;;  %v222_v12 = vld [vmem:[%s545_s28 + $0x38] sm:$0xff]  ;;  %v223_v13 = vld [vmem:[%s545_s28 + $0x40] sm:$0xff]  ;;  %v241_v14 = vmul.f32 %v405_v0, %v218_v5  ;;  %v242_v15 = vmul.f32 %v405_v0, %v219_v6  ;;  %v243_v16 = vmul.f32 %v405_v0, %v220_v7 }
  0x16   : > { %v224_v17 = vld [vmem:[%s545_s28 + $0x48] sm:$0xff]  ;;  %v225_v18 = vld [vmem:[%s545_s28 + $0x50] sm:$0xff]  ;;  %v226_v19 = vld [vmem:[%s545_s28 + $0x58] sm:$0xff]  ;;  %v244_v20 = vmul.f32 %v405_v0, %v221_v11  ;;  %v245_v21 = vmul.f32 %v405_v0, %v222_v12  ;;  %v246_v22 = vmul.f32 %v405_v0, %v223_v13  ;;  %v261_v23 = vadd.f32 %v406_v1, %v238_v8 }
  0x17   : > { %v227_v24 = vld [vmem:[%s545_s28 + $0x60] sm:$0xff]  ;;  %v228_v25 = vld [vmem:[%s545_s28 + $0x68] sm:$0xff]  ;;  %v229_v26 = vld [vmem:[%s545_s28 + $0x70] sm:$0xff]  ;;  %v247_v27 = vmul.f32 %v405_v0, %v224_v17  ;;  %v248_v28 = vmul.f32 %v405_v0, %v225_v18  ;;  %v249_v29 = vmul.f32 %v405_v0, %v226_v19  ;;  %v262_v30 = vadd.f32 %v406_v1, %v239_v9 }
  0x18   : > { %v230_v31 = vld [vmem:[%s545_s28 + $0x78] sm:$0xff]  ;;  %v250_v32 = vmul.f32 %v405_v0, %v227_v24  ;;  %v251_v33 = vmul.f32 %v405_v0, %v228_v25  ;;  %v252_v34 = vmul.f32 %v405_v0, %v229_v26  ;;  %v263_v35 = vadd.f32 %v406_v1, %v240_v10 }
  0x19   : > { %v253_v36 = vmul.f32 %v405_v0, %v230_v31  ;;  %v264_v37 = vadd.f32 %v406_v1, %v241_v14  ;;  %v265_v38 = vadd.f32 %v406_v1, %v242_v15  ;;  %v266_v39 = vadd.f32 %v406_v1, %v243_v16  ;;  %277 = vst [vmem:[%s562_s6] sm:$0xff] %v261_v23 }
  0x1a   : > { %278 = vst [vmem:[%s562_s6 + $0x8] sm:$0xff] %v262_v30  ;;  %v267_v40 = vadd.f32 %v406_v1, %v244_v20  ;;  %v268_v41 = vadd.f32 %v406_v1, %v245_v21  ;;  %v269_v42 = vadd.f32 %v406_v1, %v246_v22  ;;  %v270_v43 = vadd.f32 %v406_v1, %v247_v27 }
  0x1b   : > { %279 = vst [vmem:[%s562_s6 + $0x10] sm:$0xff] %v263_v35  ;;  %v271_v44 = vadd.f32 %v406_v1, %v248_v28  ;;  %v272_v45 = vadd.f32 %v406_v1, %v249_v29  ;;  %v273_v46 = vadd.f32 %v406_v1, %v250_v32  ;;  %v274_v47 = vadd.f32 %v406_v1, %v251_v33 }
  0x1c   : > { %280 = vst [vmem:[%s562_s6 + $0x18] sm:$0xff] %v264_v37  ;;  %281 = vst [vmem:[%s562_s6 + $0x20] sm:$0xff] %v265_v38  ;;  %v275_v48 = vadd.f32 %v406_v1, %v252_v34  ;;  %v276_v49 = vadd.f32 %v406_v1, %v253_v36 }
  0x1d   : > { %282 = vst [vmem:[%s562_s6 + $0x28] sm:$0xff] %v266_v39  ;;  %283 = vst [vmem:[%s562_s6 + $0x30] sm:$0xff] %v267_v40 }
  0x1e   : > { %284 = vst [vmem:[%s562_s6 + $0x38] sm:$0xff] %v268_v41  ;;  %285 = vst [vmem:[%s562_s6 + $0x40] sm:$0xff] %v269_v42 }
  0x1f   : > { %286 = vst [vmem:[%s562_s6 + $0x48] sm:$0xff] %v270_v43  ;;  %287 = vst [vmem:[%s562_s6 + $0x50] sm:$0xff] %v271_v44 }
  0x20   : > { %288 = vst [vmem:[%s562_s6 + $0x58] sm:$0xff] %v272_v45  ;;  %289 = vst [vmem:[%s562_s6 + $0x60] sm:$0xff] %v273_v46 }
  0x21   : > { %290 = vst [vmem:[%s562_s6 + $0x68] sm:$0xff] %v274_v47  ;;  %291 = vst [vmem:[%s562_s6 + $0x70] sm:$0xff] %v275_v48 }
  0x22   : > { %292 = vst [vmem:[%s562_s6 + $0x78] sm:$0xff] %v276_v49 }
  0x23 PF: > { %s13_s16 = sadd.s32 1, %s487_s16   ;;  %s606_s12 = smov %s479_s14 }
  0x24   : > { %p10_p7 = scmp.ge.s32.totalorder %s13_s16, 6   ;;  %s607_s13 = smov %s483_s15 }
  0x25   : > { %s608_s14 = smov %s611_s17  ;;  %s609_s15 = smov %s615_s18 }
  0x26   :  { %12 = sbr.rel (!%p10_p7) target bundleno = 3 (0x3), region = 62 }

// kernel: separable_conv_block.2
= control target key start
LH: loop header
LB: loop body
LE: loop exit
PB: predicated region body
PF: predicated region fallthrough
CT: control target
= control target key end

     0   :  { %s1804_s18 = smov 0   ;;  %s1806_s19 = smov 0   ;;  %s2586_s0 = inlined_call_operand.vmem [shape: f32[4,10,18,128], index: 0, kind: input, shape index: {}]   ;;  %s2587_s1 = inlined_call_operand.vmem [shape: f32[3,3,128], index: 1, kind: input, shape index: {}]   ;;  %s2588_s2 = inlined_call_operand.vmem [shape: f32[1,128], index: 2, kind: input, shape index: {}]   ;;  %s2589_s3 = inlined_call_operand.vmem [shape: f32[128,128], index: 3, kind: input, shape index: {}]   ;;  %s2590_s4 = inlined_call_operand.vmem [shape: f32[2,16,16,128], index: 4, kind: output, shape index: {0}]   ;;  %s2591_s5 = inlined_call_operand.vmem [shape: f32[2,2,2,128], index: 5, kind: output, shape index: {1}]  }
   0x1   :  { %s1808_s20 = smov 0   ;;  %s1810_s21 = smov 0  }
   0x2   :  { %s1812_s22 = smov 0  }
   0x3 LB: > { %s25_s23 = sadd.s32 1, %s1764_s20  ;;  %s28_s24 = sadd.s32 1, %s1768_s21  ;;  %s1772_s22 = sphi %s1812_s22, %s16_s22   ;;  %s1768_s21 = sphi %s1810_s21, %s2595_s21   ;;  %s1764_s20 = sphi %s1808_s20, %s2594_s20   ;;  %s1760_s19 = sphi %s1806_s19, %s2593_s19   ;;  %s1756_s18 = sphi %s1804_s18, %s2592_s18  }
   0x4   : > { %p26_p0 = scmp.ge.s32.totalorder %s25_s23, 2  ;;  %p1560_p1 = scmp.ge.s32.totalorder %s1772_s22, 1 }
   0x5   : > { %p214_p2 = scmp.lt.s32.totalorder %s1772_s22, 5 }
   0x6   : > { %s2597_s23 = smov (%p26_p0, %s25_s23), 0  ;;  %s2599_s24 = smov (!%p26_p0, %s28_s24), %s1768_s21 }
   0x7   : > { %p215_p3 = pnand %p1560_p1, %p214_p2  ;;  %p30_p4 = scmp.ge.s32.totalorder %s2599_s24, 2 }
   0x8   : > { %s1561_s29 = sshll.u32 (!%p215_p3), %s1760_s19, 1  ;;  %p267_p6 = scmp.lt.s32.totalorder (!%p215_p3), %s1760_s19, 1 }
   0x9   : > { %s2601_s24 = smov (%p30_p4, %s2599_s24), 0  ;;  %218 = sbr.rel (%p215_p3) target bundleno = 393 (0x189), region = 36 }
   0xa   : > { %s258_s30 = sadd.s32 (!%p215_p3), %s1756_s18, %s1561_s29  ;;  %p279_p8 = scmp.lt.s32.totalorder (!%p215_p3), %s1756_s18, 1 }
   0xb   : > { %p259_p5 = scmp.lt.s32.totalorder (!%p215_p3), %s258_s30, 3 }
   0xe   : > { %v1194_v0 = vld [vmem:[%s2589_s3 + $0x78] sm:$0xff]  ;;  %v1193_v1 = vld [vmem:[%s2589_s3 + $0x70] sm:$0xff]  ;;  %v325_v2 = vlaneseq  ;;  %v1192_v3 = vld [vmem:[%s2589_s3 + $0x68] sm:$0xff]  ;;  %s2603_s30 = smov (!%p259_p5, %s258_s30), 3  ;;  %vm485_vm0 = vcmask 1046528   ;;  %vm858_vm1 = vcmask 1045504  }
   0xf   : > { %1604 = vmatprep.subr.mxu0 %v1194_v0  ;;  %1660 = vmatprep.subr.mxu1 %v1194_v0  ;;  %v1191_v5 = vld [vmem:[%s2589_s3 + $0x60] sm:$0xff]  ;;  %v1190_v11 = vld [vmem:[%s2589_s3 + $0x58] sm:$0xff]  ;;  %s1692_s16 = smul.u32 240, %s2603_s30  ;;  %v317_v12 = vld [vmem:[%s2587_s1 + $0x8] sm:$0x7]  ;;  %s2605_s19 = smov (!%p267_p6, %s1760_s19), 1 }
  0x10   : > { %1605 = vmatpush3.msra.mxu0 %v1194_v0  ;;  %1676 = vmatpush3.msra.mxu1 %v1194_v0  ;;  %v326_v4 = vshrl.u32 %v325_v2, 7  ;;  %v315_v8 = vld [vmem:[%s2587_s1] sm:$0x7]  ;;  %v316_v9 = vld [vmem:[%s2587_s1 + $0x4] sm:$0x7]  ;;  %v1189_v17 = vld [vmem:[%s2589_s3 + $0x50] sm:$0xff] }
  0x11   : > { %1606 = vmatprep.subr.mxu0 %v1193_v1  ;;  %1661 = vmatprep.subr.mxu1 %v1193_v1  ;;  %s1878_s30 = scalar_lea.vmem %s2586_s0, %s1692_s16  ;;  %v1883_v18 = vld [vmem:[%s2588_s2] ss:$0 sm:$0xff]  ;;  %v1188_v27 = vld [vmem:[%s2589_s3 + $0x48] sm:$0xff]  ;;  %v1186_v45 = vld [vmem:[%s2589_s3 + $0x38] sm:$0xff]  ;;  %s1565_s14 = sshll.u32 %s2605_s19, 5  ;;  %vm1398_vm2 = vcmask 1040384  }
  0x12   : > { %1607 = vmatpush3.msra.mxu0 %v1193_v1  ;;  %1677 = vmatpush3.msra.mxu1 %v1193_v1  ;;  %v327_v6 = vsub.s32 0, %v326_v4  ;;  %v435_v7 = vsub.s32 1, %v326_v4  ;;  %v808_v10 = vsub.s32 2, %v326_v4  ;;  %v285_v21 = vld [vmem:[%s1878_s30] sm:$0xff]  ;;  %v286_v22 = vld [vmem:[%s1878_s30 + $0x8] sm:$0xff]  ;;  %v1892_v23 = vld [vmem:[%s1878_s30 + $0x18] sm:$0xff] }
  0x13   : > { %1608 = vmatprep.subr.mxu0 %v1192_v3  ;;  %1662 = vmatprep.subr.mxu1 %v1192_v3  ;;  %v1904_v28 = vld [vmem:[%s1878_s30 + $0x30] sm:$0xff]  ;;  %v1187_v35 = vld [vmem:[%s2589_s3 + $0x40] sm:$0xff]  ;;  %v1927_v40 = vld [vmem:[%s1878_s30 + $0x38] sm:$0xff]  ;;  %s1567_s27 = sshll.u32 %s2605_s19, 1 }
  0x14   : > { %1609 = vmatpush3.msra.mxu0 %v1192_v3  ;;  %1678 = vmatpush3.msra.mxu1 %v1192_v3  ;;  %v1864_v13 = vrot.slane %v315_v8, %v327_v6  ;;  %v1866_v14 = vrot.slane %v316_v9, %v327_v6  ;;  %v1868_v15 = vrot.slane %v317_v12, %v327_v6  ;;  %v1920_v36 = vld [vmem:[%s1878_s30 + $0x20] sm:$0xff]  ;;  %v1185_v54 = vld [vmem:[%s2589_s3 + $0x30] sm:$0xff]  ;;  %v1184_v0 = vld [vmem:[%s2589_s3 + $0x28] sm:$0xff] }
  0x15   : > { %1610 = vmatprep.subr.mxu0 %v1191_v5  ;;  %1663 = vmatprep.subr.mxu1 %v1191_v5  ;;  %v1870_v16 = vrot.slane %v315_v8, %v435_v7  ;;  %v1885_v19 = vrot.slane %v316_v9, %v435_v7  ;;  %v1887_v20 = vrot.slane %v317_v12, %v435_v7  ;;  %v287_v63 = vld [vmem:[%s1878_s30 + $0x10] sm:$0x3]  ;;  %v1980_v6 = vld [vmem:[%s1878_s30 + $0x40] sm:$0x3] }
  0x16   : > { %1611 = vmatpush3.msra.mxu0 %v1191_v5  ;;  %1679 = vmatpush3.msra.mxu1 %v1191_v5  ;;  %v1894_v24 = vrot.slane %v315_v8, %v808_v10  ;;  %v1896_v25 = vrot.slane %v316_v9, %v808_v10  ;;  %v1898_v26 = vrot.slane %v317_v12, %v808_v10  ;;  %v1977_v5 = vld [vmem:[%s1878_s30 + $0x28] sm:$0x3] }
  0x17   : > { %1612 = vmatprep.subr.mxu0 %v1190_v11  ;;  %1664 = vmatprep.subr.mxu1 %v1190_v11  ;;  %v329_v29 = vmul.f32 %v1864_v13, %v285_v21  ;;  %v330_v30 = vmul.f32 %v1864_v13, %v286_v22  ;;  %v365_v31 = vmul.f32 %v1866_v14, %v1892_v23 }
  0x18   : > { %1613 = vmatpush3.msra.mxu0 %v1190_v11  ;;  %1680 = vmatpush3.msra.mxu1 %v1190_v11  ;;  %v401_v32 = vmul.f32 %v1868_v15, %v1904_v28  ;;  %v437_v33 = vmul.f32 %v1870_v16, %v285_v21  ;;  %v1914_v34 = vmul.f32 %v1870_v16, %v286_v22  ;;  %v1183_v11 = vld [vmem:[%s2589_s3 + $0x20] sm:$0xff] }
  0x19   : > { %1614 = vmatprep.subr.mxu0 %v1189_v17  ;;  %1665 = vmatprep.subr.mxu1 %v1189_v17  ;;  %v345_v37 = vadd.f32 %v1883_v18, %v329_v29  ;;  %v346_v38 = vadd.f32 %v1883_v18, %v330_v30  ;;  %v562_v39 = vmul.f32 %v1885_v19, %v1892_v23 }
  0x1a   : > { %1615 = vmatpush3.msra.mxu0 %v1189_v17  ;;  %1681 = vmatpush3.msra.mxu1 %v1189_v17  ;;  %v486_v41 = vrot.slane %v437_v33, 1  ;;  %v487_v42 = vrot.slane %v1914_v34, 1  ;;  %v1932_v43 = vmul.f32 %v1885_v19, %v1920_v36  ;;  %v686_v44 = vmul.f32 %v1887_v20, %v1904_v28  ;;  %v1180_v34 = vld [vmem:[%s2589_s3 + $0x8] sm:$0xff] }
  0x1b   : > { %1616 = vmatprep.subr.mxu0 %v1188_v27  ;;  %1666 = vmatprep.subr.mxu1 %v1188_v27  ;;  %v381_v46 = vadd.f32 %v365_v31, %v345_v37  ;;  %v610_v47 = vrot.slane %v562_v39, 1  ;;  %v1941_v48 = vmul.f32 %v1887_v20, %v1927_v40  ;;  %v810_v49 = vmul.f32 %v1894_v24, %v285_v21 }
  0x1c   : > { %1617 = vmatpush3.msra.mxu0 %v1188_v27  ;;  %1682 = vmatpush3.msra.mxu1 %v1188_v27  ;;  %v488_v50 = vsel %vm485_vm0, %v486_v41, %v487_v42  ;;  %v611_v51 = vrot.slane %v1932_v43, 1  ;;  %v734_v52 = vrot.slane %v686_v44, 1  ;;  %v1949_v53 = vmul.f32 %v1894_v24, %v286_v22 }
  0x1d   : > { %1618 = vmatprep.subr.mxu0 %v1187_v35  ;;  %1667 = vmatprep.subr.mxu1 %v1187_v35  ;;  %v417_v55 = vadd.f32 %v401_v32, %v381_v46  ;;  %v735_v56 = vrot.slane %v1941_v48, 1  ;;  %v859_v57 = vrot.slane %v810_v49, 2  ;;  %v935_v58 = vmul.f32 %v1896_v25, %v1892_v23  ;;  %v1182_v32 = vld [vmem:[%s2589_s3 + $0x18] sm:$0xff]  ;;  %v1181_v46 = vld [vmem:[%s2589_s3 + $0x10] sm:$0xff] }
  0x1e   : > { %1619 = vmatpush3.msra.mxu0 %v1187_v35  ;;  %1683 = vmatpush3.msra.mxu1 %v1187_v35  ;;  %v612_v59 = vsel %vm485_vm0, %v610_v47, %v611_v51  ;;  %v860_v60 = vrot.slane %v1949_v53, 2  ;;  %v1963_v61 = vmul.f32 %v1896_v25, %v1920_v36  ;;  %v1059_v62 = vmul.f32 %v1898_v26, %v1904_v28 }
  0x1f   : > { %1620 = vmatprep.subr.mxu0 %v1186_v45  ;;  %1668 = vmatprep.subr.mxu1 %v1186_v45  ;;  %v542_v1 = vadd.f32 %v488_v50, %v417_v55  ;;  %v736_v2 = vsel %vm485_vm0, %v734_v52, %v735_v56  ;;  %v983_v3 = vrot.slane %v935_v58, 2  ;;  %v1974_v4 = vmul.f32 %v1898_v26, %v1927_v40  ;;  %v2014_v52 = vld [vmem:[%s1878_s30 + $0x48] sm:$0xff] }
  0x20   : > { %1621 = vmatpush3.msra.mxu0 %v1186_v45  ;;  %1684 = vmatpush3.msra.mxu1 %v1186_v45  ;;  %v861_v7 = vsel %vm858_vm1, %v859_v57, %v860_v60  ;;  %v984_v8 = vrot.slane %v1963_v61, 2  ;;  %v1107_v9 = vrot.slane %v1059_v62, 2  ;;  %v366_v10 = vmul.f32 %v1866_v14, %v1920_v36 }
  0x21   : > { %1622 = vmatprep.subr.mxu0 %v1185_v54  ;;  %1669 = vmatprep.subr.mxu1 %v1185_v54  ;;  %v666_v12 = vadd.f32 %v612_v59, %v542_v1  ;;  %v1108_v17 = vrot.slane %v1974_v4, 2  ;;  %v402_v21 = vmul.f32 %v1868_v15, %v1927_v40  ;;  %v439_v22 = vmul.f32 %v1870_v16, %v287_v63  ;;  %v2039_v4 = vld [vmem:[%s1878_s30 + $0x50] sm:$0xff] }
  0x22   : > { %1623 = vmatpush3.msra.mxu0 %v1185_v54  ;;  %1685 = vmatpush3.msra.mxu1 %v1185_v54  ;;  %v985_v27 = vsel %vm858_vm1, %v983_v3, %v984_v8  ;;  %v382_v29 = vadd.f32 %v366_v10, %v346_v38  ;;  %v564_v30 = vmul.f32 %v1885_v19, %v1977_v5 }
  0x23   : > { %1624 = vmatprep.subr.mxu0 %v1184_v0  ;;  %v688_v31 = vmul.f32 %v1887_v20, %v1980_v6  ;;  %v790_v33 = vadd.f32 %v736_v2, %v666_v12  ;;  %v1109_v35 = vsel %vm858_vm1, %v1107_v9, %v1108_v17  ;;  %v489_v37 = vrot.slane %v439_v22, 1  ;;  %1670 = vmatprep.subr.mxu1 %v1184_v0 }
  0x24   : > { %1625 = vmatpush3.msra.mxu0 %v1184_v0  ;;  %v812_v39 = vmul.f32 %v1894_v24, %v287_v63  ;;  %v418_v38 = vadd.f32 %v402_v21, %v382_v29  ;;  %v613_v41 = vrot.slane %v564_v30, 1  ;;  %v937_v45 = vmul.f32 %v1896_v25, %v1977_v5  ;;  %1686 = vmatpush3.msra.mxu1 %v1184_v0 }
  0x25   : > { %1626 = vmatprep.subr.mxu0 %v1183_v11  ;;  %v737_v44 = vrot.slane %v688_v31, 1  ;;  %v915_v47 = vadd.f32 %v861_v7, %v790_v33  ;;  %v490_v48 = vsel %vm485_vm0, %v487_v42, %v489_v37  ;;  %v1061_v50 = vmul.f32 %v1898_v26, %v1980_v6  ;;  %1671 = vmatprep.subr.mxu1 %v1183_v11 }
  0x26   : > { %1627 = vmatpush3.msra.mxu0 %v1183_v11  ;;  %v862_v49 = vrot.slane %v812_v39, 2  ;;  %v543_v53 = vadd.f32 %v490_v48, %v418_v38  ;;  %v614_v54 = vsel %vm485_vm0, %v611_v51, %v613_v41  ;;  %v986_v57 = vrot.slane %v937_v45, 2  ;;  %1687 = vmatpush3.msra.mxu1 %v1183_v11 }
  0x27   : > { %1628 = vmatprep.subr.mxu0 %v1182_v32  ;;  %v738_v55 = vsel %vm485_vm0, %v735_v56, %v737_v44  ;;  %v1039_v42 = vadd.f32 %v985_v27, %v915_v47  ;;  %v1110_v59 = vrot.slane %v1061_v50, 2  ;;  %v331_v61 = vmul.f32 %v1864_v13, %v1892_v23  ;;  %1672 = vmatprep.subr.mxu1 %v1182_v32 }
  0x28   : > { %1629 = vmatpush3.msra.mxu0 %v1182_v32  ;;  %v863_v58 = vsel %vm858_vm1, %v860_v60, %v862_v49  ;;  %v667_v43 = vadd.f32 %v614_v54, %v543_v53  ;;  %v987_v51 = vsel %vm858_vm1, %v984_v8, %v986_v57  ;;  %v367_v56 = vmul.f32 %v1866_v14, %v1904_v28  ;;  %v1179_v60 = vld [vmem:[%s2589_s3] sm:$0xff] }
  0x29   : > { %1630 = vmatprep.subr.mxu0 %v1181_v46  ;;  %v403_v62 = vmul.f32 %v1868_v15, %v2014_v52  ;;  %v1163_v63 = vadd.f32 %v1109_v35, %v1039_v42  ;;  %v1111_v0 = vsel %vm858_vm1, %v1108_v17, %v1110_v59  ;;  %v347_v1 = vadd.f32 %v1883_v18, %v331_v61 }
  0x2a   : > { %1631 = vmatpush3.msra.mxu0 %v1181_v46  ;;  %v440_v2 = vmul.f32 %v1870_v16, %v1892_v23  ;;  %v791_v3 = vadd.f32 %v738_v55, %v667_v43  ;;  %v2043_v7 = vmul.f32 %v1870_v16, %v1920_v36  ;;  %v565_v8 = vmul.f32 %v1885_v19, %v1904_v28  ;;  %v2076_v55 = vld [vmem:[%s1878_s30 + $0x58] sm:$0x3] }
  0x2b   : > { %1632 = vmatprep.subr.mxu0 %v1180_v34  ;;  %v2049_v9 = vmul.f32 %v1885_v19, %v1927_v40  ;;  %1636 = vmatprep.mubr.f32.mxu0 %v1163_v63  ;;  %v383_v10 = vadd.f32 %v367_v56, %v347_v1  ;;  %v689_v12 = vmul.f32 %v1887_v20, %v2014_v52 }
  0x2c   : > { %1633 = vmatpush3.msra.mxu0 %v1180_v34  ;;  %v491_v11 = vrot.slane %v440_v2, 1  ;;  %v2055_v17 = vmul.f32 %v1887_v20, %v2039_v4  ;;  %v916_v21 = vadd.f32 %v863_v58, %v791_v3  ;;  %v492_v22 = vrot.slane %v2043_v7, 1  ;;  %1688 = vmatpush3.msra.mxu1 %v1182_v32 }
  0x2d   : > { %1634 = vmatprep.subr.mxu0 %v1179_v60  ;;  %v615_v27 = vrot.slane %v565_v8, 1  ;;  %v616_v29 = vrot.slane %v2049_v9, 1  ;;  %v419_v30 = vadd.f32 %v403_v62, %v383_v10  ;;  %v739_v31 = vrot.slane %v689_v12, 1  ;;  %1673 = vmatprep.subr.mxu1 %v1181_v46 }
  0x2e   : > { %1635 = vmatpush3.msra.mxu0 %v1179_v60  ;;  %v740_v33 = vrot.slane %v2055_v17, 1  ;;  %v813_v35 = vmul.f32 %v1894_v24, %v1892_v23  ;;  %v1040_v37 = vadd.f32 %v987_v51, %v916_v21  ;;  %v493_v39 = vsel %vm485_vm0, %v491_v11, %v492_v22  ;;  %1689 = vmatpush3.msra.mxu1 %v1181_v46 }
  0x2f   : > { %v617_v38 = vsel %vm485_vm0, %v615_v27, %v616_v29  ;;  %v814_v41 = vmul.f32 %v1894_v24, %v1920_v36  ;;  %v544_v32 = vadd.f32 %v493_v39, %v419_v30  ;;  %v938_v47 = vmul.f32 %v1896_v25, %v1904_v28  ;;  %1674 = vmatprep.subr.mxu1 %v1180_v34  ;;  %v2101_v27 = vld [vmem:[%s1878_s30 + $0x60] sm:$0xff] }
  0x30   : > { %v741_v44 = vsel %vm485_vm0, %v739_v31, %v740_v33  ;;  %v864_v45 = vrot.slane %v813_v35, 2  ;;  %v1164_v23 = vadd.f32 %v1111_v0, %v1040_v37  ;;  %v939_v49 = vmul.f32 %v1896_v25, %v1927_v40  ;;  %1690 = vmatpush3.msra.mxu1 %v1180_v34 }
  0x31   : > { %v865_v48 = vrot.slane %v814_v41, 2  ;;  %v1062_v50 = vmul.f32 %v1898_v26, %v2014_v52  ;;  %v668_v53 = vadd.f32 %v617_v38, %v544_v32  ;;  %v988_v54 = vrot.slane %v938_v47, 2  ;;  %1675 = vmatprep.subr.mxu1 %v1179_v60 }
  0x32   : > { %v1063_v46 = vmul.f32 %v1898_v26, %v2039_v4  ;;  %v332_v57 = vmul.f32 %v1864_v13, %v1920_v36  ;;  %1637 = vmatmul.mubr.f32.vlgmr.msra.gmra.mxu0 %v1164_v23  ;;  %v989_v58 = vrot.slane %v939_v49, 2  ;;  %v368_v61 = vmul.f32 %v1866_v14, %v1927_v40  ;;  %1691 = vmatpush3.msra.mxu1 %v1179_v60 }
  0x33   : > { %v866_v42 = vsel %vm858_vm1, %v864_v45, %v865_v48  ;;  %v1112_v59 = vrot.slane %v1062_v50, 2  ;;  %v792_v34 = vadd.f32 %v741_v44, %v668_v53  ;;  %v404_v56 = vmul.f32 %v1868_v15, %v2039_v4 }
  0x34   : > { %v1113_v43 = vrot.slane %v1063_v46, 2  ;;  %v348_v51 = vadd.f32 %v1883_v18, %v332_v57  ;;  %v990_v62 = vsel %vm858_vm1, %v988_v54, %v989_v58  ;;  %v442_v36 = vmul.f32 %v1870_v16, %v1977_v5 }
  0x35   : > { %v567_v63 = vmul.f32 %v1885_v19, %v1980_v6  ;;  %v691_v0 = vmul.f32 %v1887_v20, %v2076_v55  ;;  %v917_v60 = vadd.f32 %v866_v42, %v792_v34  ;;  %v815_v3 = vmul.f32 %v1894_v24, %v1977_v5 }
  0x36   : > { %v1114_v1 = vsel %vm858_vm1, %v1112_v59, %v1113_v43  ;;  %v384_v2 = vadd.f32 %v368_v61, %v348_v51  ;;  %v494_v7 = vrot.slane %v442_v36, 1  ;;  %v940_v10 = vmul.f32 %v1896_v25, %v1980_v6 }
  0x37   : > { %v618_v8 = vrot.slane %v567_v63, 1  ;;  %v742_v9 = vrot.slane %v691_v0, 1  ;;  %v1041_v11 = vadd.f32 %v990_v62, %v917_v60  ;;  %v867_v17 = vrot.slane %v815_v3, 2 }
  0x38   : > { %v420_v12 = vadd.f32 %v404_v56, %v384_v2  ;;  %v1064_v21 = vmul.f32 %v1898_v26, %v2076_v55  ;;  %v495_v30 = vsel %vm485_vm0, %v492_v22, %v494_v7  ;;  %v991_v35 = vrot.slane %v940_v10, 2 }
  0x39   : > { %v619_v31 = vsel %vm485_vm0, %v616_v29, %v618_v8  ;;  %v743_v5 = vsel %vm485_vm0, %v740_v33, %v742_v9  ;;  %v1165_v37 = vadd.f32 %v1114_v1, %v1041_v11  ;;  %v868_v38 = vsel %vm858_vm1, %v865_v48, %v867_v17  ;;  %v2122_v48 = vld [vmem:[%s1878_s30 + $0x68] sm:$0xff] }
  0x3a   : > { %v545_v39 = vadd.f32 %v495_v30, %v420_v12  ;;  %v1115_v41 = vrot.slane %v1064_v21, 2  ;;  %v992_v32 = vsel %vm858_vm1, %v989_v58, %v991_v35  ;;  %v333_v44 = vmul.f32 %v1864_v13, %v1904_v28  ;;  %v2150_v30 = vld [vmem:[%s1878_s30 + $0x70] sm:$0x3] }
  0x3b   : > { %v369_v45 = vmul.f32 %v1866_v14, %v2014_v52  ;;  %v405_v22 = vmul.f32 %v1868_v15, %v2101_v27  ;;  %1639 = vmatprep.mubr.f32.mxu0 %v1165_v37  ;;  %v443_v47 = vmul.f32 %v1870_v16, %v1904_v28  ;;  %v2119_v23 = vmul.f32 %v1870_v16, %v1927_v40 }
  0x3c   : > { %v669_v29 = vadd.f32 %v619_v31, %v545_v39  ;;  %v1116_v33 = vsel %vm858_vm1, %v1113_v43, %v1115_v41  ;;  %v349_v49 = vadd.f32 %v1883_v18, %v333_v44  ;;  %v568_v50 = vmul.f32 %v1885_v19, %v2014_v52 }
  0x3d   : > { %v569_v53 = vmul.f32 %v1885_v19, %v2039_v4  ;;  %v692_v54 = vmul.f32 %v1887_v20, %v2101_v27  ;;  %v496_v57 = vrot.slane %v443_v47, 1  ;;  %v497_v42 = vrot.slane %v2119_v23, 1 }
  0x3e   : > { %v793_v46 = vadd.f32 %v743_v5, %v669_v29  ;;  %v693_v58 = vmul.f32 %v1887_v20, %v2122_v48  ;;  %v385_v59 = vadd.f32 %v369_v45, %v349_v49  ;;  %v620_v61 = vrot.slane %v568_v50, 1 }
  0x3f   : > { %v621_v34 = vrot.slane %v569_v53, 1  ;;  %v744_v43 = vrot.slane %v692_v54, 1  ;;  %v498_v56 = vsel %vm485_vm0, %v496_v57, %v497_v42  ;;  %v816_v36 = vmul.f32 %v1894_v24, %v1904_v28 }
  0x40   : > { %v918_v51 = vadd.f32 %v868_v38, %v793_v46  ;;  %v745_v62 = vrot.slane %v693_v58, 1  ;;  %v421_v63 = vadd.f32 %v405_v22, %v385_v59  ;;  %v817_v60 = vmul.f32 %v1894_v24, %v1927_v40 }
  0x41   : > { %v622_v0 = vsel %vm485_vm0, %v620_v61, %v621_v34  ;;  %v941_v1 = vmul.f32 %v1896_v25, %v2014_v52  ;;  %v869_v7 = vrot.slane %v816_v36, 2  ;;  %v942_v8 = vmul.f32 %v1896_v25, %v2039_v4 }
  0x42   : > { %v1042_v2 = vadd.f32 %v992_v32, %v918_v51  ;;  %v746_v3 = vsel %vm485_vm0, %v744_v43, %v745_v62  ;;  %v546_v9 = vadd.f32 %v498_v56, %v421_v63  ;;  %v870_v10 = vrot.slane %v817_v60, 2  ;;  %v2175_v43 = vld [vmem:[%s1878_s30 + $0x78] sm:$0xff] }
  0x43   : > { %v993_v28 = vrot.slane %v941_v1, 2  ;;  %v1065_v11 = vmul.f32 %v1898_v26, %v2101_v27  ;;  %v994_v17 = vrot.slane %v942_v8, 2  ;;  %v1066_v21 = vmul.f32 %v1898_v26, %v2122_v48 }
  0x44   : > { %v1166_v12 = vadd.f32 %v1116_v33, %v1042_v2  ;;  %v334_v31 = vmul.f32 %v1864_v13, %v1927_v40  ;;  %v670_v5 = vadd.f32 %v622_v0, %v546_v9  ;;  %v871_v35 = vsel %vm858_vm1, %v869_v7, %v870_v10 }
  0x45   : > { %v1117_v37 = vrot.slane %v1065_v11, 2  ;;  %v370_v39 = vmul.f32 %v1866_v14, %v2039_v4  ;;  %v995_v38 = vsel %vm858_vm1, %v993_v28, %v994_v17  ;;  %v1118_v41 = vrot.slane %v1066_v21, 2 }
  0x46   : > { %1640 = vmatmul.mubr.f32.gmra.mxu0 %v1166_v12  ;;  %v350_v32 = vadd.f32 %v1883_v18, %v334_v31  ;;  %v406_v44 = vmul.f32 %v1868_v15, %v2122_v48  ;;  %v794_v45 = vadd.f32 %v746_v3, %v670_v5  ;;  %v445_v40 = vmul.f32 %v1870_v16, %v1980_v6 }
  0x47   : > { %v570_v22 = vmul.f32 %v1885_v19, %v2076_v55  ;;  %v694_v29 = vmul.f32 %v1887_v20, %v2150_v30  ;;  %v1119_v33 = vsel %vm858_vm1, %v1117_v37, %v1118_v41  ;;  %v818_v23 = vmul.f32 %v1894_v24, %v1980_v6 }
  0x48   : > { %v386_v47 = vadd.f32 %v370_v39, %v350_v32  ;;  %v943_v49 = vmul.f32 %v1896_v25, %v2076_v55  ;;  %v919_v50 = vadd.f32 %v871_v35, %v794_v45  ;;  %v499_v53 = vrot.slane %v445_v40, 1 }
  0x49   : > { %v623_v54 = vrot.slane %v570_v22, 1  ;;  %v747_v46 = vrot.slane %v694_v29, 1  ;;  %v872_v58 = vrot.slane %v818_v23, 2  ;;  %v1067_v61 = vmul.f32 %v1898_v26, %v2150_v30 }
  0x4a   : > { %v422_v57 = vadd.f32 %v406_v44, %v386_v47  ;;  %v996_v59 = vrot.slane %v943_v49, 2  ;;  %v1043_v51 = vadd.f32 %v995_v38, %v919_v50  ;;  %v500_v56 = vsel %vm485_vm0, %v497_v42, %v499_v53 }
  0x4b   : > { %v624_v6 = vsel %vm485_vm0, %v621_v34, %v623_v54  ;;  %v748_v36 = vsel %vm485_vm0, %v745_v62, %v747_v46  ;;  %v873_v0 = vsel %vm858_vm1, %v870_v10, %v872_v58  ;;  %v1120_v1 = vrot.slane %v1067_v61, 2  ;;  %v2196_v10 = vld [vmem:[%s1878_s30 + $0x80] sm:$0xff] }
  0x4c   : > { %v547_v63 = vadd.f32 %v500_v56, %v422_v57  ;;  %v997_v60 = vsel %vm858_vm1, %v994_v17, %v996_v59  ;;  %v1167_v2 = vadd.f32 %v1119_v33, %v1043_v51  ;;  %v335_v3 = vmul.f32 %v1864_v13, %v2014_v52  ;;  %v2224_v51 = vld [vmem:[%s1878_s30 + $0x88] sm:$0x3] }
  0x4d   : > { %v371_v7 = vmul.f32 %v1866_v14, %v2101_v27  ;;  %v407_v42 = vmul.f32 %v1868_v15, %v2175_v43  ;;  %v1121_v34 = vsel %vm858_vm1, %v1118_v41, %v1120_v1  ;;  %v446_v62 = vmul.f32 %v1870_v16, %v2014_v52 }
  0x4e   : > { %v671_v8 = vadd.f32 %v624_v6, %v547_v63  ;;  %v2193_v9 = vmul.f32 %v1870_v16, %v2039_v4  ;;  %1642 = vmatprep.mubr.f32.mxu0 %v1167_v2  ;;  %v351_v28 = vadd.f32 %v1883_v18, %v335_v3  ;;  %v571_v11 = vmul.f32 %v1885_v19, %v2101_v27 }
  0x4f   : > { %v572_v12 = vmul.f32 %v1885_v19, %v2122_v48  ;;  %v695_v17 = vmul.f32 %v1887_v20, %v2175_v43  ;;  %v501_v31 = vrot.slane %v446_v62, 1  ;;  %v696_v35 = vmul.f32 %v1887_v20, %v2196_v10 }
  0x50   : > { %v795_v21 = vadd.f32 %v748_v36, %v671_v8  ;;  %v502_v5 = vrot.slane %v2193_v9, 1  ;;  %v387_v37 = vadd.f32 %v371_v7, %v351_v28  ;;  %v625_v39 = vrot.slane %v571_v11, 1 }
  0x51   : > { %v626_v38 = vrot.slane %v572_v12, 1  ;;  %v749_v41 = vrot.slane %v695_v17, 1  ;;  %v750_v45 = vrot.slane %v696_v35, 1  ;;  %v819_v40 = vmul.f32 %v1894_v24, %v2014_v52 }
  0x52   : > { %v920_v32 = vadd.f32 %v873_v0, %v795_v21  ;;  %v503_v44 = vsel %vm485_vm0, %v501_v31, %v502_v5  ;;  %v423_v22 = vadd.f32 %v407_v42, %v387_v37  ;;  %v820_v33 = vmul.f32 %v1894_v24, %v2039_v4 }
  0x53   : > { %v627_v29 = vsel %vm485_vm0, %v625_v39, %v626_v38  ;;  %v944_v47 = vmul.f32 %v1896_v25, %v2101_v27  ;;  %v751_v49 = vsel %vm485_vm0, %v749_v41, %v750_v45  ;;  %v874_v50 = vrot.slane %v819_v40, 2  ;;  %v2249_v41 = vld [vmem:[%s1878_s30 + $0x90] sm:$0xff] }
  0x54   : > { %v1044_v23 = vadd.f32 %v997_v60, %v920_v32  ;;  %v945_v53 = vmul.f32 %v1896_v25, %v2122_v48  ;;  %v548_v54 = vadd.f32 %v503_v44, %v423_v22  ;;  %v875_v46 = vrot.slane %v820_v33, 2 }
  0x55   : > { %v998_v52 = vrot.slane %v944_v47, 2  ;;  %v1068_v57 = vmul.f32 %v1898_v26, %v2175_v43  ;;  %v1069_v61 = vmul.f32 %v1898_v26, %v2196_v10  ;;  %v336_v56 = vmul.f32 %v1864_v13, %v2039_v4 }
  0x56   : > { %v1168_v58 = vadd.f32 %v1121_v34, %v1044_v23  ;;  %v999_v59 = vrot.slane %v945_v53, 2  ;;  %v672_v6 = vadd.f32 %v627_v29, %v548_v54  ;;  %v876_v36 = vsel %vm858_vm1, %v874_v50, %v875_v46 }
  0x57   : > { %v1122_v63 = vrot.slane %v1068_v57, 2  ;;  %v372_v0 = vmul.f32 %v1866_v14, %v2122_v48  ;;  %v1123_v1 = vrot.slane %v1069_v61, 2  ;;  %v352_v2 = vadd.f32 %v1883_v18, %v336_v56 }
  0x58   : > { %1643 = vmatmul.mubr.f32.gmra.mxu0 %v1168_v58  ;;  %v1000_v60 = vsel %vm858_vm1, %v998_v52, %v999_v59  ;;  %v408_v3 = vmul.f32 %v1868_v15, %v2196_v10  ;;  %v796_v7 = vadd.f32 %v751_v49, %v672_v6  ;;  %v448_v4 = vmul.f32 %v1870_v16, %v2076_v55 }
  0x59   : > { %v573_v42 = vmul.f32 %v1885_v19, %v2150_v30  ;;  %v697_v8 = vmul.f32 %v1887_v20, %v2224_v51  ;;  %v1124_v34 = vsel %vm858_vm1, %v1122_v63, %v1123_v1  ;;  %v388_v62 = vadd.f32 %v372_v0, %v352_v2 }
  0x5a   : > { %v821_v9 = vmul.f32 %v1894_v24, %v2076_v55  ;;  %v946_v28 = vmul.f32 %v1896_v25, %v2150_v30  ;;  %v921_v11 = vadd.f32 %v876_v36, %v796_v7  ;;  %v504_v12 = vrot.slane %v448_v4, 1 }
  0x5b   : > { %v628_v17 = vrot.slane %v573_v42, 1  ;;  %v752_v21 = vrot.slane %v697_v8, 1  ;;  %v424_v31 = vadd.f32 %v408_v3, %v388_v62  ;;  %v1070_v39 = vmul.f32 %v1898_v26, %v2224_v51 }
  0x5c   : > { %v877_v35 = vrot.slane %v821_v9, 2  ;;  %v1001_v37 = vrot.slane %v946_v28, 2  ;;  %v1045_v32 = vadd.f32 %v1000_v60, %v921_v11  ;;  %v505_v44 = vsel %vm485_vm0, %v502_v5, %v504_v12 }
  0x5d   : > { %v629_v55 = vsel %vm485_vm0, %v626_v38, %v628_v17  ;;  %v753_v40 = vsel %vm485_vm0, %v750_v45, %v752_v21  ;;  %v549_v22 = vadd.f32 %v505_v44, %v424_v31  ;;  %v1125_v47 = vrot.slane %v1070_v39, 2 }
  0x5e   : > { %v878_v29 = vsel %vm858_vm1, %v875_v46, %v877_v35  ;;  %v1002_v33 = vsel %vm858_vm1, %v999_v59, %v1001_v37  ;;  %v1169_v23 = vadd.f32 %v1124_v34, %v1045_v32  ;;  %v337_v49 = vmul.f32 %v1864_v13, %v2101_v27  ;;  %v2270_v46 = vld [vmem:[%s1878_s30 + $0x98] sm:$0xff]  ;;  %v2298_v32 = vld [vmem:[%s1878_s30 + $0xa0] sm:$0x3] }
  0x5f   : > { %v373_v50 = vmul.f32 %v1866_v14, %v2175_v43  ;;  %v409_v5 = vmul.f32 %v1868_v15, %v2249_v41  ;;  %v673_v53 = vadd.f32 %v629_v55, %v549_v22  ;;  %v1126_v38 = vsel %vm858_vm1, %v1123_v1, %v1125_v47 }
  0x60   : > { %v449_v45 = vmul.f32 %v1870_v16, %v2101_v27  ;;  %v2267_v54 = vmul.f32 %v1870_v16, %v2122_v48  ;;  %1645 = vmatprep.mubr.f32.mxu0 %v1169_v23  ;;  %v353_v52 = vadd.f32 %v1883_v18, %v337_v49  ;;  %v574_v57 = vmul.f32 %v1885_v19, %v2175_v43 }
  0x61   : > { %v575_v58 = vmul.f32 %v1885_v19, %v2196_v10  ;;  %v698_v59 = vmul.f32 %v1887_v20, %v2249_v41  ;;  %v797_v61 = vadd.f32 %v753_v40, %v673_v53  ;;  %v699_v36 = vmul.f32 %v1887_v20, %v2270_v46 }
  0x62   : > { %v506_v56 = vrot.slane %v449_v45, 1  ;;  %v507_v6 = vrot.slane %v2267_v54, 1  ;;  %v389_v63 = vadd.f32 %v373_v50, %v353_v52  ;;  %v630_v0 = vrot.slane %v574_v57, 1 }
  0x63   : > { %v631_v60 = vrot.slane %v575_v58, 1  ;;  %v754_v1 = vrot.slane %v698_v59, 1  ;;  %v922_v2 = vadd.f32 %v878_v29, %v797_v61  ;;  %v755_v7 = vrot.slane %v699_v36, 1 }
  0x64   : > { %v508_v3 = vsel %vm485_vm0, %v506_v56, %v507_v6  ;;  %v822_v4 = vmul.f32 %v1894_v24, %v2101_v27  ;;  %v425_v42 = vadd.f32 %v409_v5, %v389_v63  ;;  %v823_v34 = vmul.f32 %v1894_v24, %v2122_v48 }
  0x65   : > { %v632_v8 = vsel %vm485_vm0, %v630_v0, %v631_v60  ;;  %v947_v62 = vmul.f32 %v1896_v25, %v2175_v43  ;;  %v1046_v9 = vadd.f32 %v1002_v33, %v922_v2  ;;  %v756_v28 = vsel %vm485_vm0, %v754_v1, %v755_v7  ;;  %v2323_v1 = vld [vmem:[%s1878_s30 + $0xa8] sm:$0xff] }
  0x66   : > { %v879_v11 = vrot.slane %v822_v4, 2  ;;  %v948_v12 = vmul.f32 %v1896_v25, %v2196_v10  ;;  %v550_v17 = vadd.f32 %v508_v3, %v425_v42  ;;  %v880_v21 = vrot.slane %v823_v34, 2 }
  0x67   : > { %v1003_v27 = vrot.slane %v947_v62, 2  ;;  %v1071_v31 = vmul.f32 %v1898_v26, %v2249_v41  ;;  %v1170_v35 = vadd.f32 %v1126_v38, %v1046_v9  ;;  %v1072_v39 = vmul.f32 %v1898_v26, %v2270_v46 }
  0x68   : > { %v1004_v37 = vrot.slane %v948_v12, 2  ;;  %v338_v44 = vmul.f32 %v1864_v13, %v2122_v48  ;;  %v674_v55 = vadd.f32 %v632_v8, %v550_v17  ;;  %v881_v40 = vsel %vm858_vm1, %v879_v11, %v880_v21 }
  0x69   : > { %v1127_v22 = vrot.slane %v1071_v31, 2  ;;  %v374_v29 = vmul.f32 %v1866_v14, %v2196_v10  ;;  %1646 = vmatmul.mubr.f32.gmra.mxu0 %v1170_v35  ;;  %v1128_v47 = vrot.slane %v1072_v39, 2  ;;  %v410_v49 = vmul.f32 %v1868_v15, %v2270_v46 }
  0x6a   : > { %v1005_v33 = vsel %vm858_vm1, %v1003_v27, %v1004_v37  ;;  %v354_v23 = vadd.f32 %v1883_v18, %v338_v44  ;;  %v798_v50 = vadd.f32 %v756_v28, %v674_v55  ;;  %v451_v48 = vmul.f32 %v1870_v16, %v2150_v30 }
  0x6b   : > { %v576_v5 = vmul.f32 %v1885_v19, %v2224_v51  ;;  %v700_v53 = vmul.f32 %v1887_v20, %v2298_v32  ;;  %v1129_v38 = vsel %vm858_vm1, %v1127_v22, %v1128_v47  ;;  %v824_v54 = vmul.f32 %v1894_v24, %v2150_v30 }
  0x6c   : > { %v390_v45 = vadd.f32 %v374_v29, %v354_v23  ;;  %v949_v52 = vmul.f32 %v1896_v25, %v2224_v51  ;;  %v923_v57 = vadd.f32 %v881_v40, %v798_v50  ;;  %v509_v58 = vrot.slane %v451_v48, 1 }
  0x6d   : > { %v633_v59 = vrot.slane %v576_v5, 1  ;;  %v757_v61 = vrot.slane %v700_v53, 1  ;;  %v882_v36 = vrot.slane %v824_v54, 2  ;;  %v1073_v0 = vmul.f32 %v1898_v26, %v2298_v32 }
  0x6e   : > { %v426_v56 = vadd.f32 %v410_v49, %v390_v45  ;;  %v1006_v63 = vrot.slane %v949_v52, 2  ;;  %v1047_v2 = vadd.f32 %v1005_v33, %v923_v57  ;;  %v510_v3 = vsel %vm485_vm0, %v507_v6, %v509_v58 }
  0x6f   : > { %v634_v30 = vsel %vm485_vm0, %v631_v60, %v633_v59  ;;  %v758_v4 = vsel %vm485_vm0, %v755_v7, %v757_v61  ;;  %v883_v8 = vsel %vm858_vm1, %v880_v21, %v882_v36  ;;  %v1130_v62 = vrot.slane %v1073_v0, 2  ;;  %v2344_v21 = vld [vmem:[%s1878_s30 + $0xb0] sm:$0xff] }
  0x70   : > { %v551_v42 = vadd.f32 %v510_v3, %v426_v56  ;;  %v1007_v34 = vsel %vm858_vm1, %v1004_v37, %v1006_v63  ;;  %v1171_v9 = vadd.f32 %v1129_v38, %v1047_v2  ;;  %v339_v28 = vmul.f32 %v1864_v13, %v2175_v43  ;;  %v2372_v2 = vld [vmem:[%s1878_s30 + $0xb8] sm:$0x3] }
  0x71   : > { %v375_v11 = vmul.f32 %v1866_v14, %v2249_v41  ;;  %v411_v6 = vmul.f32 %v1868_v15, %v2323_v1  ;;  %v1131_v60 = vsel %vm858_vm1, %v1128_v47, %v1130_v62  ;;  %v452_v7 = vmul.f32 %v1870_v16, %v2175_v43 }
  0x72   : > { %v675_v12 = vadd.f32 %v634_v30, %v551_v42  ;;  %v2341_v17 = vmul.f32 %v1870_v16, %v2196_v10  ;;  %1648 = vmatprep.mubr.f32.mxu1 %v1171_v9  ;;  %v355_v27 = vadd.f32 %v1883_v18, %v339_v28  ;;  %v577_v31 = vmul.f32 %v1885_v19, %v2249_v41 }
  0x73   : > { %v578_v35 = vmul.f32 %v1885_v19, %v2270_v46  ;;  %v701_v37 = vmul.f32 %v1887_v20, %v2323_v1  ;;  %v511_v44 = vrot.slane %v452_v7, 1  ;;  %v702_v40 = vmul.f32 %v1887_v20, %v2344_v21 }
  0x74   : > { %v799_v39 = vadd.f32 %v758_v4, %v675_v12  ;;  %v512_v55 = vrot.slane %v2341_v17, 1  ;;  %v391_v22 = vadd.f32 %v375_v11, %v355_v27  ;;  %v635_v29 = vrot.slane %v577_v31, 1 }
  0x75   : > { %v636_v33 = vrot.slane %v578_v35, 1  ;;  %v759_v47 = vrot.slane %v701_v37, 1  ;;  %v760_v50 = vrot.slane %v702_v40, 1  ;;  %v825_v48 = vmul.f32 %v1894_v24, %v2175_v43 }
  0x76   : > { %v924_v23 = vadd.f32 %v883_v8, %v799_v39  ;;  %v513_v49 = vsel %vm485_vm0, %v511_v44, %v512_v55  ;;  %v427_v5 = vadd.f32 %v411_v6, %v391_v22  ;;  %v826_v38 = vmul.f32 %v1894_v24, %v2196_v10 }
  0x77   : > { %v637_v53 = vsel %vm485_vm0, %v635_v29, %v636_v33  ;;  %v950_v45 = vmul.f32 %v1896_v25, %v2249_v41  ;;  %v761_v52 = vsel %vm485_vm0, %v759_v47, %v760_v50  ;;  %v884_v57 = vrot.slane %v825_v48, 2  ;;  %v2397_v29 = vld [vmem:[%s1878_s30 + $0xc0] sm:$0xff] }
  0x78   : > { %v1048_v54 = vadd.f32 %v1007_v34, %v924_v23  ;;  %v951_v58 = vmul.f32 %v1896_v25, %v2270_v46  ;;  %v552_v59 = vadd.f32 %v513_v49, %v427_v5  ;;  %v885_v61 = vrot.slane %v826_v38, 2 }
  0x79   : > { %v1008_v43 = vrot.slane %v950_v45, 2  ;;  %v1074_v56 = vmul.f32 %v1898_v26, %v2323_v1  ;;  %v1075_v0 = vmul.f32 %v1898_v26, %v2344_v21  ;;  %v340_v3 = vmul.f32 %v1864_v13, %v2196_v10 }
  0x7a   : > { %v1172_v36 = vadd.f32 %v1131_v60, %v1048_v54  ;;  %v1009_v63 = vrot.slane %v951_v58, 2  ;;  %v676_v30 = vadd.f32 %v637_v53, %v552_v59  ;;  %v886_v4 = vsel %vm858_vm1, %v884_v57, %v885_v61  ;;  %v2418_v59 = vld [vmem:[%s1878_s30 + $0xc8] sm:$0xff] }
  0x7b   : > { %v1132_v42 = vrot.slane %v1074_v56, 2  ;;  %v376_v8 = vmul.f32 %v1866_v14, %v2270_v46  ;;  %v1133_v62 = vrot.slane %v1075_v0, 2  ;;  %v356_v9 = vadd.f32 %v1883_v18, %v340_v3 }
  0x7c   : > { %1649 = vmatmul.mubr.f32.vlgmr.msra.gmra.mxu1 %v1172_v36  ;;  %v1010_v34 = vsel %vm858_vm1, %v1008_v43, %v1009_v63  ;;  %v412_v28 = vmul.f32 %v1868_v15, %v2344_v21  ;;  %v800_v11 = vadd.f32 %v761_v52, %v676_v30  ;;  %v454_v10 = vmul.f32 %v1870_v16, %v2224_v51 }
  0x7d   : > { %v579_v6 = vmul.f32 %v1885_v19, %v2298_v32  ;;  %v703_v12 = vmul.f32 %v1887_v20, %v2372_v2  ;;  %v1134_v60 = vsel %vm858_vm1, %v1132_v42, %v1133_v62  ;;  %v392_v7 = vadd.f32 %v376_v8, %v356_v9 }
  0x7e   : > { %v827_v18 = vmul.f32 %v1894_v24, %v2224_v51  ;;  %v952_v17 = vmul.f32 %v1896_v25, %v2298_v32  ;;  %v925_v27 = vadd.f32 %v886_v4, %v800_v11  ;;  %v514_v31 = vrot.slane %v454_v10, 1 }
  0x7f   : > { %v638_v35 = vrot.slane %v579_v6, 1  ;;  %v762_v37 = vrot.slane %v703_v12, 1  ;;  %v428_v39 = vadd.f32 %v412_v28, %v392_v7  ;;  %v1076_v22 = vmul.f32 %v1898_v26, %v2372_v2 }
  0x80   : > { %v887_v44 = vrot.slane %v827_v18, 2  ;;  %v1011_v40 = vrot.slane %v952_v17, 2  ;;  %v1049_v47 = vadd.f32 %v1010_v34, %v925_v27  ;;  %v515_v23 = vsel %vm485_vm0, %v512_v55, %v514_v31 }
  0x81   : > { %v639_v51 = vsel %vm485_vm0, %v636_v33, %v638_v35  ;;  %v763_v49 = vsel %vm485_vm0, %v760_v50, %v762_v37  ;;  %v553_v48 = vadd.f32 %v515_v23, %v428_v39  ;;  %v1135_v38 = vrot.slane %v1076_v22, 2 }
  0x82   : > { %v888_v5 = vsel %vm858_vm1, %v885_v61, %v887_v44  ;;  %v1012_v53 = vsel %vm858_vm1, %v1009_v63, %v1011_v40  ;;  %v1173_v45 = vadd.f32 %v1134_v60, %v1049_v47  ;;  %v341_v54 = vmul.f32 %v1864_v13, %v2249_v41  ;;  %v2423_v61 = vld [vmem:[%s2588_s2] ss:$0 sm:$0xff]  ;;  %v2451_v47 = vld [vmem:[%s1878_s30 + $0xd0] sm:$0x3] }
  0x83   : > { %v377_v52 = vmul.f32 %v1866_v14, %v2323_v1  ;;  %v413_v55 = vmul.f32 %v1868_v15, %v2397_v29  ;;  %v677_v57 = vadd.f32 %v639_v51, %v553_v48  ;;  %v1136_v33 = vsel %vm858_vm1, %v1133_v62, %v1135_v38 }
  0x84   : > { %v455_v50 = vmul.f32 %v1870_v16, %v2249_v41  ;;  %v2415_v58 = vmul.f32 %v1870_v16, %v2270_v46  ;;  %1651 = vmatprep.mubr.f32.mxu1 %v1173_v45  ;;  %v357_v43 = vadd.f32 %v2423_v61, %v341_v54  ;;  %v580_v56 = vmul.f32 %v1885_v19, %v2323_v1 }
  0x85   : > { %v581_v36 = vmul.f32 %v1885_v19, %v2344_v21  ;;  %v704_v63 = vmul.f32 %v1887_v20, %v2397_v29  ;;  %v801_v0 = vadd.f32 %v763_v49, %v677_v57  ;;  %v705_v4 = vmul.f32 %v1887_v20, %v2418_v59 }
  0x86   : > { %v516_v3 = vrot.slane %v455_v50, 1  ;;  %v517_v30 = vrot.slane %v2415_v58, 1  ;;  %v393_v42 = vadd.f32 %v377_v52, %v357_v43  ;;  %v640_v8 = vrot.slane %v580_v56, 1 }
  0x87   : > { %v641_v34 = vrot.slane %v581_v36, 1  ;;  %v764_v62 = vrot.slane %v704_v63, 1  ;;  %v926_v9 = vadd.f32 %v888_v5, %v801_v0  ;;  %v765_v11 = vrot.slane %v705_v4, 1 }
  0x88   : > { %v518_v28 = vsel %vm485_vm0, %v516_v3, %v517_v30  ;;  %v828_v10 = vmul.f32 %v1894_v24, %v2249_v41  ;;  %v429_v6 = vadd.f32 %v413_v55, %v393_v42  ;;  %v829_v60 = vmul.f32 %v1894_v24, %v2270_v46 }
  0x89   : > { %v642_v12 = vsel %vm485_vm0, %v640_v8, %v641_v34  ;;  %v953_v7 = vmul.f32 %v1896_v25, %v2323_v1  ;;  %v1050_v18 = vadd.f32 %v1012_v53, %v926_v9  ;;  %v766_v17 = vsel %vm485_vm0, %v764_v62, %v765_v11  ;;  %v312_v62 = vld [vmem:[%s1878_s30 + $0xd8] sm:$0xff] }
  0x8a   : > { %v889_v27 = vrot.slane %v828_v10, 2  ;;  %v954_v31 = vmul.f32 %v1896_v25, %v2344_v21  ;;  %v554_v35 = vadd.f32 %v518_v28, %v429_v6  ;;  %v890_v37 = vrot.slane %v829_v60, 2  ;;  %v313_v6 = vld [vmem:[%s1878_s30 + $0xe0] sm:$0xff] }
  0x8b   : > { %v1013_v41 = vrot.slane %v953_v7, 2  ;;  %v1077_v39 = vmul.f32 %v1898_v26, %v2397_v29  ;;  %v1174_v44 = vadd.f32 %v1136_v33, %v1050_v18  ;;  %v1078_v22 = vmul.f32 %v1898_v26, %v2418_v59 }
  0x8c   : > { %v1014_v40 = vrot.slane %v954_v31, 2  ;;  %v342_v23 = vmul.f32 %v1864_v13, %v2270_v46  ;;  %v678_v51 = vadd.f32 %v642_v12, %v554_v35  ;;  %v891_v49 = vsel %vm858_vm1, %v889_v27, %v890_v37 }
  0x8d   : > { %v1137_v48 = vrot.slane %v1077_v39, 2  ;;  %v378_v5 = vmul.f32 %v1866_v14, %v2344_v21  ;;  %1652 = vmatmul.mubr.f32.gmra.mxu1 %v1174_v44  ;;  %v1138_v38 = vrot.slane %v1078_v22, 2  ;;  %v414_v54 = vmul.f32 %v1868_v15, %v2418_v59 }
  0x8e   : > { %v1015_v53 = vsel %vm858_vm1, %v1013_v41, %v1014_v40  ;;  %v358_v45 = vadd.f32 %v2423_v61, %v342_v23  ;;  %v802_v52 = vadd.f32 %v766_v17, %v678_v51  ;;  %v457_v46 = vmul.f32 %v1870_v16, %v2298_v32 }
  0x8f   : > { %v582_v55 = vmul.f32 %v1885_v19, %v2372_v2  ;;  %v706_v57 = vmul.f32 %v1887_v20, %v2451_v47  ;;  %v1139_v33 = vsel %vm858_vm1, %v1137_v48, %v1138_v38  ;;  %v830_v58 = vmul.f32 %v1894_v24, %v2298_v32 }
  0x90   : > { %v394_v50 = vadd.f32 %v378_v5, %v358_v45  ;;  %v955_v43 = vmul.f32 %v1896_v25, %v2372_v2  ;;  %v927_v56 = vadd.f32 %v891_v49, %v802_v52  ;;  %v519_v36 = vrot.slane %v457_v46, 1 }
  0x91   : > { %v643_v63 = vrot.slane %v582_v55, 1  ;;  %v767_v0 = vrot.slane %v706_v57, 1  ;;  %v892_v4 = vrot.slane %v830_v58, 2  ;;  %v1079_v8 = vmul.f32 %v1898_v26, %v2451_v47 }
  0x92   : > { %v430_v3 = vadd.f32 %v414_v54, %v394_v50  ;;  %v1016_v42 = vrot.slane %v955_v43, 2  ;;  %v1051_v9 = vadd.f32 %v1015_v53, %v927_v56  ;;  %v520_v28 = vsel %vm485_vm0, %v517_v30, %v519_v36 }
  0x93   : > { %v644_v10 = vsel %vm485_vm0, %v641_v34, %v643_v63  ;;  %v768_v32 = vsel %vm485_vm0, %v765_v11, %v767_v0  ;;  %v893_v60 = vsel %vm858_vm1, %v890_v37, %v892_v4  ;;  %v1140_v18 = vrot.slane %v1079_v8, 2  ;;  %v314_v8 = vld [vmem:[%s1878_s30 + $0xe8] sm:$0x3]  ;;  %s1563_s30 = sshll.u32 %s1756_s18, 3  ;;  %s2609_s18 = smov (!%p279_p8, %s1756_s18), 1 }
  0x94   : > { %v555_v12 = vadd.f32 %v520_v28, %v430_v3  ;;  %v1017_v7 = vsel %vm858_vm1, %v1014_v40, %v1016_v42  ;;  %v1175_v17 = vadd.f32 %v1139_v33, %v1051_v9  ;;  %v343_v27 = vmul.f32 %v1864_v13, %v2323_v1  ;;  %p269_p7 = scmp.lt.s32.totalorder %s1563_s30, 15  ;;  %s282_s28 = sadd.s32 %s1567_s27, %s2609_s18 }
  0x95   : > { %v379_v31 = vmul.f32 %v1866_v14, %v2397_v29  ;;  %v415_v30 = vmul.f32 %v1868_v15, %v312_v62  ;;  %v1141_v34 = vsel %vm858_vm1, %v1138_v38, %v1140_v18  ;;  %v416_v11 = vmul.f32 %v1868_v15, %v313_v6  ;;  %s1568_s29 = sshll.u32 %s282_s28, 1 }
  0x96   : > { %v679_v35 = vadd.f32 %v644_v10, %v555_v12  ;;  %v458_v37 = vmul.f32 %v1870_v16, %v2323_v1  ;;  %1654 = vmatprep.mubr.f32.mxu1 %v1175_v17  ;;  %v359_v41 = vadd.f32 %v2423_v61, %v343_v27  ;;  %v459_v39 = vmul.f32 %v1870_v16, %v2344_v21  ;;  %s2607_s30 = smov (!%p269_p7, %s1563_s30), 15  ;;  %s284_s8 = scalar_lea.vmem %s2591_s5, %s1568_s29 }
  0x97   : > { %v583_v44 = vmul.f32 %v1885_v19, %v2397_v29  ;;  %v584_v40 = vmul.f32 %v1885_v19, %v2418_v59  ;;  %v707_v51 = vmul.f32 %v1887_v20, %v312_v62  ;;  %v708_v15 = vmul.f32 %v1887_v20, %v313_v6  ;;  %s1564_s13 = sshll.u32 %s2607_s30, 1 }
  0x98   : > { %v803_v22 = vadd.f32 %v768_v32, %v679_v35  ;;  %v521_v23 = vrot.slane %v458_v37, 1  ;;  %v395_v49 = vadd.f32 %v379_v31, %v359_v41  ;;  %v522_v48 = vrot.slane %v459_v39, 1  ;;  %s273_s15 = sadd.s32 %s1565_s14, %s1564_s13 }
  0x99   : > { %v645_v5 = vrot.slane %v583_v44, 1  ;;  %v646_v53 = vrot.slane %v584_v40, 1  ;;  %v769_v45 = vrot.slane %v707_v51, 1  ;;  %v770_v54 = vrot.slane %v708_v15, 1  ;;  %s1566_s16 = sshll.u32 %s273_s15, 3 }
  0x9a   : > { %v928_v38 = vadd.f32 %v893_v60, %v803_v22  ;;  %v831_v52 = vmul.f32 %v1894_v24, %v2323_v1  ;;  %v431_v46 = vadd.f32 %v415_v30, %v395_v49  ;;  %v523_v55 = vsel %vm485_vm0, %v521_v23, %v522_v48  ;;  %s2547_s26 = scalar_lea.vmem %s2590_s4, %s1566_s16 }
  0x9b   : > { %v647_v57 = vsel %vm485_vm0, %v645_v5, %v646_v53  ;;  %v832_v33 = vmul.f32 %v1894_v24, %v2344_v21  ;;  %v771_v58 = vsel %vm485_vm0, %v769_v45, %v770_v54  ;;  %v956_v56 = vmul.f32 %v1896_v25, %v2397_v29 }
  0x9c   : > { %v1052_v50 = vadd.f32 %v1017_v7, %v928_v38  ;;  %v894_v43 = vrot.slane %v831_v52, 2  ;;  %v556_v36 = vadd.f32 %v523_v55, %v431_v46  ;;  %v957_v1 = vmul.f32 %v1896_v25, %v2418_v59 }
  0x9d   : > { %v895_v63 = vrot.slane %v832_v33, 2  ;;  %v1080_v0 = vmul.f32 %v1898_v26, %v312_v62  ;;  %v1018_v4 = vrot.slane %v956_v56, 2  ;;  %v1081_v42 = vmul.f32 %v1898_v26, %v313_v6 }
  0x9e   : > { %v1176_v3 = vadd.f32 %v1141_v34, %v1052_v50  ;;  %v344_v9 = vmul.f32 %v1864_v13, %v2344_v21  ;;  %v680_v28 = vadd.f32 %v647_v57, %v556_v36  ;;  %v1019_v32 = vrot.slane %v957_v1, 2 }
  0x9f   : > { %v896_v10 = vsel %vm858_vm1, %v894_v43, %v895_v63  ;;  %v1142_v29 = vrot.slane %v1080_v0, 2  ;;  %v1143_v12 = vrot.slane %v1081_v42, 2  ;;  %v380_v62 = vmul.f32 %v1866_v14, %v2418_v59 }
  0xa0   : > { %1655 = vmatmul.mubr.f32.gmra.mxu1 %v1176_v3  ;;  %v360_v60 = vadd.f32 %v2423_v61, %v344_v9  ;;  %v460_v7 = vmul.f32 %v1870_v16, %v2372_v2  ;;  %v804_v6 = vadd.f32 %v771_v58, %v680_v28  ;;  %v585_v18 = vmul.f32 %v1885_v19, %v2451_v47 }
  0xa1   : > { %v709_v13 = vmul.f32 %v1887_v20, %v314_v8  ;;  %v1020_v21 = vsel %vm858_vm1, %v1018_v4, %v1019_v32  ;;  %v833_v31 = vmul.f32 %v1894_v24, %v2372_v2  ;;  %v958_v14 = vmul.f32 %v1896_v25, %v2451_v47 }
  0xa2   : > { %v396_v17 = vadd.f32 %v380_v62, %v360_v60  ;;  %v524_v27 = vrot.slane %v460_v7, 1  ;;  %v929_v61 = vadd.f32 %v896_v10, %v804_v6  ;;  %v648_v30 = vrot.slane %v585_v18, 1 }
  0xa3   : > { %v772_v35 = vrot.slane %v709_v13, 1  ;;  %v1144_v16 = vsel %vm858_vm1, %v1142_v29, %v1143_v12  ;;  %v897_v37 = vrot.slane %v833_v31, 2  ;;  %v1082_v41 = vmul.f32 %v1898_v26, %v314_v8 }
  0xa4   : > { %v432_v59 = vadd.f32 %v416_v11, %v396_v17  ;;  %v525_v19 = vsel %vm485_vm0, %v522_v48, %v524_v27  ;;  %v1053_v34 = vadd.f32 %v1020_v21, %v929_v61  ;;  %v649_v20 = vsel %vm485_vm0, %v646_v53, %v648_v30 }
  0xa5   : > { %v773_v2 = vsel %vm485_vm0, %v770_v54, %v772_v35  ;;  %v1021_v44 = vrot.slane %v958_v14, 2  ;;  %v898_v47 = vsel %vm858_vm1, %v895_v63, %v897_v37  ;;  %v1145_v11 = vrot.slane %v1082_v41, 2 }
  0xa6   : > { %v557_v39 = vadd.f32 %v525_v19, %v432_v59  ;;  %v1177_v24 = vadd.f32 %v1144_v16, %v1053_v34 }
  0xa7   : > { %v1022_v22 = vsel %vm858_vm1, %v1019_v32, %v1021_v44  ;;  %v1146_v51 = vsel %vm858_vm1, %v1143_v12, %v1145_v11 }
  0xa8   : > { %v681_v25 = vadd.f32 %v649_v20, %v557_v39  ;;  %1657 = vmatprep.mubr.f32.mxu1 %v1177_v24 }
  0xaa   : > { %v805_v40 = vadd.f32 %v773_v2, %v681_v25 }
  0xac   : > { %v930_v23 = vadd.f32 %v898_v47, %v805_v40 }
  0xae   : > { %v1054_v26 = vadd.f32 %v1022_v22, %v930_v23 }
  0xb0   : > { %v1178_v15 = vadd.f32 %v1146_v51, %v1054_v26 }
  0xb2   : > { %1658 = vmatmul.mubr.f32.gmra.mxu1 %v1178_v15 }
  0xf2   : > { %v1638_v49 = vpop.f32.mrf.mxu0 }
  0xf3   : > { %1402 = vst [vmem:[%s2547_s26 + $0x8] sm:$0xff] %v1638_v49  ;;  %v1362_v5 = vmul.f32 %v1638_v49, %v1638_v49 }
  0xf4   : > { %v1261_v48 = vpop.f32.mrf.mxu0 }
  0xf5   : > { %v1340_v53 = vadd.f32 %v1638_v49, %v1261_v48  ;;  %v1361_v38 = vmul.f32 %v1261_v48, %v1261_v48  ;;  %1401 = vst [vmem:[%s2547_s26] sm:$0xff] %v1261_v48 }
  0xf7   : > { %v1377_v45 = vadd.f32 %v1362_v5, %v1361_v38 }
 0x106   : > { %v1641_v54 = vpop.f32.mrf.mxu0 }
 0x107   : > { %1404 = vst [vmem:[%s2547_s26 + $0x18] sm:$0xff] %v1641_v54  ;;  %v1364_v57 = vmul.f32 %v1641_v54, %v1641_v54 }
 0x108   : > { %v1271_v52 = vpop.f32.mrf.mxu0 }
 0x109   : > { %v1341_v46 = vadd.f32 %v1340_v53, %v1271_v52  ;;  %v1363_v55 = vmul.f32 %v1271_v52, %v1271_v52  ;;  %1403 = vst [vmem:[%s2547_s26 + $0x10] sm:$0xff] %v1271_v52 }
 0x10b   : > { %v1378_v33 = vadd.f32 %v1377_v45, %v1363_v55  ;;  %v1342_v50 = vadd.f32 %v1641_v54, %v1341_v46 }
 0x10d   : > { %v1379_v58 = vadd.f32 %v1378_v33, %v1364_v57 }
 0x118   : > { %v1644_v43 = vpop.f32.mrf.mxu0 }
 0x119   : > { %1406 = vst [vmem:[%s2547_s26 + $0x28] sm:$0xff] %v1644_v43  ;;  %v1366_v1 = vmul.f32 %v1644_v43, %v1644_v43 }
 0x11a   : > { %v1281_v56 = vpop.f32.mrf.mxu0 }
 0x11b   : > { %v1343_v36 = vadd.f32 %v1342_v50, %v1281_v56  ;;  %v1365_v63 = vmul.f32 %v1281_v56, %v1281_v56  ;;  %1405 = vst [vmem:[%s2547_s26 + $0x20] sm:$0xff] %v1281_v56 }
 0x11d   : > { %v1380_v0 = vadd.f32 %v1379_v58, %v1365_v63  ;;  %v1344_v3 = vadd.f32 %v1644_v43, %v1343_v36 }
 0x11f   : > { %v1381_v4 = vadd.f32 %v1380_v0, %v1366_v1 }
 0x129   : > { %v1647_v42 = vpop.f32.mrf.mxu0 }
 0x12a   : > { %1408 = vst [vmem:[%s2547_s26 + $0x38] sm:$0xff] %v1647_v42  ;;  %v1368_v62 = vmul.f32 %v1647_v42, %v1647_v42 }
 0x12b   : > { %v1291_v8 = vpop.f32.mrf.mxu0 }
 0x12c   : > { %1407 = vst [vmem:[%s2547_s26 + $0x30] sm:$0xff] %v1291_v8  ;;  %v1367_v29 = vmul.f32 %v1291_v8, %v1291_v8  ;;  %v1345_v12 = vadd.f32 %v1344_v3, %v1291_v8 }
 0x12e   : > { %v1382_v60 = vadd.f32 %v1381_v4, %v1367_v29  ;;  %v1346_v7 = vadd.f32 %v1647_v42, %v1345_v12 }
 0x130   : > { %v1383_v6 = vadd.f32 %v1382_v60, %v1368_v62 }
 0x13c   : > { %v1650_v9 = vpop.f32.mrf.mxu1 }
 0x13d   : > { %1410 = vst [vmem:[%s2547_s26 + $0x48] sm:$0xff] %v1650_v9  ;;  %v1370_v27 = vmul.f32 %v1650_v9, %v1650_v9 }
 0x13e   : > { %v1301_v28 = vpop.f32.mrf.mxu1 }
 0x13f   : > { %1409 = vst [vmem:[%s2547_s26 + $0x40] sm:$0xff] %v1301_v28  ;;  %v1347_v18 = vadd.f32 %v1346_v7, %v1301_v28  ;;  %v1369_v13 = vmul.f32 %v1301_v28, %v1301_v28 }
 0x141   : > { %v1384_v21 = vadd.f32 %v1383_v6, %v1369_v13  ;;  %v1348_v31 = vadd.f32 %v1650_v9, %v1347_v18 }
 0x143   : > { %v1385_v30 = vadd.f32 %v1384_v21, %v1370_v27 }
 0x14d   : > { %v1653_v10 = vpop.f32.mrf.mxu1 }
 0x14e   : > { %1412 = vst [vmem:[%s2547_s26 + $0x58] sm:$0xff] %v1653_v10  ;;  %v1372_v59 = vmul.f32 %v1653_v10, %v1653_v10 }
 0x14f   : > { %v1311_v32 = vpop.f32.mrf.mxu1 }
 0x150   : > { %1411 = vst [vmem:[%s2547_s26 + $0x50] sm:$0xff] %v1311_v32  ;;  %v1349_v35 = vadd.f32 %v1348_v31, %v1311_v32  ;;  %v1371_v14 = vmul.f32 %v1311_v32, %v1311_v32 }
 0x152   : > { %v1386_v16 = vadd.f32 %v1385_v30, %v1371_v14  ;;  %v1350_v19 = vadd.f32 %v1653_v10, %v1349_v35 }
 0x154   : > { %v1387_v34 = vadd.f32 %v1386_v16, %v1372_v59 }
 0x160   : > { %v1656_v17 = vpop.f32.mrf.mxu1 }
 0x161   : > { %1414 = vst [vmem:[%s2547_s26 + $0x68] sm:$0xff] %v1656_v17  ;;  %v1374_v39 = vmul.f32 %v1656_v17, %v1656_v17 }
 0x162   : > { %v1321_v61 = vpop.f32.mrf.mxu1 }
 0x163   : > { %1413 = vst [vmem:[%s2547_s26 + $0x60] sm:$0xff] %v1321_v61  ;;  %v1351_v20 = vadd.f32 %v1350_v19, %v1321_v61  ;;  %v1373_v37 = vmul.f32 %v1321_v61, %v1321_v61 }
 0x165   : > { %v1388_v41 = vadd.f32 %v1387_v34, %v1373_v37  ;;  %v1352_v24 = vadd.f32 %v1656_v17, %v1351_v20 }
 0x167   : > { %v1389_v44 = vadd.f32 %v1388_v41, %v1374_v39 }
 0x172   : > { %v1659_v2 = vpop.f32.mrf.mxu1 }
 0x173   : > { %1416 = vst [vmem:[%s2547_s26 + $0x78] sm:$0xff] %v1659_v2  ;;  %v1376_v40 = vmul.f32 %v1659_v2, %v1659_v2 }
 0x174   : > { %v1331_v25 = vpop.f32.mrf.mxu1 }
 0x175   : > { %v1353_v47 = vadd.f32 %v1352_v24, %v1331_v25  ;;  %v1375_v11 = vmul.f32 %v1331_v25, %v1331_v25  ;;  %1415 = vst [vmem:[%s2547_s26 + $0x70] sm:$0xff] %v1331_v25 }
 0x177   : > { %v1354_v22 = vadd.f32 %v1659_v2, %v1353_v47  ;;  %v1390_v23 = vadd.f32 %v1389_v44, %v1375_v11 }
 0x179   : > { %v1355_v51 = vrot.slane %v1354_v22, 4  ;;  %v1391_v26 = vadd.f32 %v1390_v23, %v1376_v40 }
 0x17b   : > { %v1356_v15 = vadd.f32 %v1355_v51, %v1354_v22  ;;  %v1392_v49 = vrot.slane %v1391_v26, 4 }
 0x17d   : > { %v1357_v48 = vrot.slane %v1356_v15, 2  ;;  %v1393_v5 = vadd.f32 %v1392_v49, %v1391_v26 }
 0x17f   : > { %v1358_v53 = vadd.f32 %v1357_v48, %v1356_v15  ;;  %v1394_v38 = vrot.slane %v1393_v5, 2 }
 0x181   : > { %v1359_v45 = vrot.slane %v1358_v53, 1  ;;  %v1395_v54 = vadd.f32 %v1394_v38, %v1393_v5 }
 0x183   : > { %v1396_v52 = vrot.slane %v1395_v54, 1  ;;  %v1360_v46 = vadd.f32 %v1359_v45, %v1358_v53 }
 0x185   : > { %v1397_v55 = vadd.f32 %v1396_v52, %v1395_v54 }
 0x187   : > { %v1399_v57 = vsel %vm1398_vm2, %v1360_v46, %v1397_v55 }
 0x188   : > { %1400 = vst [vmem:[%s284_s8] sm:$0x3] %v1399_v57 }
 0x189 PF: > { %s16_s22 = sadd.s32 1, %s1772_s22   ;;  %s2592_s18 = smov %s1764_s20 }
 0x18a   : > { %p13_p9 = scmp.ge.s32.totalorder %s16_s22, 6   ;;  %s2593_s19 = smov %s1768_s21 }
 0x18b   : > { %s2594_s20 = smov %s2597_s23  ;;  %s2595_s21 = smov %s2601_s24 }
 0x18c   :  { %15 = sbr.rel (!%p13_p9) target bundleno = 3 (0x3), region = 78 }

</bundles_post_ra>
